<compile_context>
chip_gen: v7x
topology: tpu7x:2x2x1
jax: 0.10.0
libtpu: 0.0.40
codegen_flags: <defaults>
</compile_context>

<pallas_src>
import functools

import jax
import jax.numpy as jnp
from jax.experimental import pallas as pl
from jax.experimental.pallas import tpu as pltpu


# ---------------------------------------------------------------------------
# Kernels
# ---------------------------------------------------------------------------
def _ffn_kernel_fused(x_ref, w1_ref, b1_ref, w2_ref, b2_ref, o_ref):
    """k_tiles == 1: whole d_ff resident in VMEM, single fused step."""
    h = jnp.dot(x_ref[...], w1_ref[...], preferred_element_type=jnp.float32)
    h = jnp.maximum(h + b1_ref[...].astype(jnp.float32), 0.0)
    o = jnp.dot(h.astype(w2_ref.dtype), w2_ref[...],
                preferred_element_type=jnp.float32)
    o_ref[...] = (o + b2_ref[...].astype(jnp.float32)).astype(o_ref.dtype)


def _ffn_kernel_acc_out(x_ref, w1_ref, b1_ref, w2_ref, b2_ref, o_ref):
    """Streamed d_ff, f32 output: accumulate straight into the VMEM-resident
    output block (its block index is constant across k) — no scratch."""
    k = pl.program_id(1)

    @pl.when(k == 0)
    def _():
        o_ref[...] = jnp.zeros_like(o_ref)

    h = jnp.dot(x_ref[...], w1_ref[...], preferred_element_type=jnp.float32)
    h = jnp.maximum(h + b1_ref[...].astype(jnp.float32), 0.0)
    o_ref[...] += jnp.dot(h.astype(w2_ref.dtype), w2_ref[...],
                          preferred_element_type=jnp.float32)

    @pl.when(k == pl.num_programs(1) - 1)
    def _():
        o_ref[...] += b2_ref[...].astype(jnp.float32)


def _ffn_kernel_acc_scratch(x_ref, w1_ref, b1_ref, w2_ref, b2_ref, o_ref,
                            acc_ref):
    """Streamed d_ff, narrow (e.g. bf16) output: f32 scratch accumulator."""
    k = pl.program_id(1)

    @pl.when(k == 0)
    def _():
        acc_ref[...] = jnp.zeros_like(acc_ref)

    h = jnp.dot(x_ref[...], w1_ref[...], preferred_element_type=jnp.float32)
    h = jnp.maximum(h + b1_ref[...].astype(jnp.float32), 0.0)
    acc_ref[...] += jnp.dot(h.astype(w2_ref.dtype), w2_ref[...],
                            preferred_element_type=jnp.float32)

    @pl.when(k == pl.num_programs(1) - 1)
    def _():
        o_ref[...] = (acc_ref[...] + b2_ref[...].astype(jnp.float32)
                      ).astype(o_ref.dtype)


# ---------------------------------------------------------------------------
# Wrapper
# ---------------------------------------------------------------------------
def _round_up(x, m):
    return (x + m - 1) // m * m


def _tpu_vmem_and_gen():
    """Best-effort (trace-time) detection of TPU generation & per-core VMEM."""
    kind = ""
    try:
        kind = jax.devices()[0].device_kind.lower()
    except Exception:
        pass
    if "v7" in kind:
        gen = 7
    elif "v6" in kind:
        gen = 6
    elif "v5 lite" in kind or "v5lite" in kind or "v5e" in kind:
        gen = 5
    else:
        gen = 6  # conservative default (128 MiB VMEM class)

    vmem = None
    try:
        vmem = int(getattr(pltpu.get_tpu_info(), "vmem_capacity_bytes"))
    except Exception:
        vmem = None
    if not vmem or vmem <= 0:
        vmem = (64 << 20) if gen >= 7 else (128 << 20)
    if gen >= 7:
        vmem = min(vmem, 64 << 20)  # v7x VMEM is per-TensorCore
    return vmem, gen


@functools.partial(jax.jit, static_argnames=("tm", "tk", "force_stream"))
def positionwise_ffn(x, w1, b1, w2, b2, *, tm=None, tk=None,
                     force_stream=False):
    """x: [B, S, d_model]; w1: [d_model, d_ff]; b1: [d_ff];
    w2: [d_ff, d_model]; b2: [d_model].  Weights stored as [d_in, d_out]
    (pre-transposed relative to PyTorch nn.Linear.weight).

    bf16 storage for x / weights is recommended on v5e/v6e/v7x; the kernel
    always accumulates in f32 (preferred_element_type)."""
    B, S, d_model = x.shape
    d_ff = w1.shape[1]
    M = B * S

    x_isz = jnp.dtype(x.dtype).itemsize
    w_isz = jnp.dtype(w1.dtype).itemsize
    out_dtype = x.dtype
    out_isz = x_isz

    vmem_cap, gen = _tpu_vmem_and_gen()
    budget = int(vmem_cap * 0.8)
    margin = 6 << 20  # Mosaic internal scratch / pipelining headroom

    # --- Row tile (tm): big enough to beat the weight-streaming roofline.
    sub = 16 if x_isz == 2 else 8
    m_align = 128 if gen <= 5 else 256          # MXU-height multiple
    if gen >= 7:
        tm_target, tk_target = 512, 512          # 64 MiB VMEM, ~310 flop/B
    elif gen == 6:
        tm_target, tk_target = 1024, 512         # ~650-700 flop/B roofline
    else:
        tm_target, tk_target = 256, 512          # v5e: ~240 flop/B roofline

    tm_req = tm_target if tm is None else max(sub, int(tm))
    if M <= tm_req:
        tm_eff = _round_up(M, sub)
    else:
        tm_eff = _round_up(tm_req, m_align if tm is None else sub)
    if gen >= 7 and tm is None:
        # Make sure both v7x TensorCores get an m-tile even for small M.
        tm_eff = max(sub, min(tm_eff, _round_up((M + 1) // 2, sub)))

    def footprint(tm_, tk_, need_acc):
        return (2 * tm_ * d_model * x_isz          # x tiles (double-buffered)
                + 2 * d_model * tk_ * w_isz        # W1 slabs
                + 2 * 8 * tk_ * w_isz              # b1 slabs
                + 2 * tk_ * d_model * w_isz        # W2 slabs
                + 2 * 8 * d_model * w_isz          # b2
                + 2 * tm_ * d_model * out_isz      # out tiles
                + tm_ * tk_ * (4 + w_isz)          # h (f32) + cast to w dtype
                + (tm_ * d_model * 4 if need_acc else 0))

    need_acc = out_dtype != jnp.float32

    # --- d_ff tile (tk): weight-resident fast path when everything fits VMEM,
    # so W1/W2 are DMAed exactly once for the whole kernel.
    if (not force_stream and tk is None
            and footprint(tm_eff, d_ff, False) + margin <= budget):
        tk_eff = d_ff
    else:
        tk_req = tk_target if tk is None else max(128, (int(tk) // 128) * 128)
        if d_ff % 128 != 0 or d_ff <= tk_req:
            tk_eff = d_ff                        # block == full dim, no padding
        else:
            # Largest multiple of 128 that divides d_ff and is <= tk_req, so
            # the weights never need a per-call jnp.pad copy.
            tk_eff = 128
            c = 256
            while c <= tk_req:
                if d_ff % c == 0:
                    tk_eff = c
                c += 128
        acc_flag = need_acc and tk_eff < d_ff
        while (footprint(tm_eff, tk_eff, acc_flag) + margin > budget
               and tm_eff > max(sub, 64)):
            tm_eff = max(sub, _round_up(tm_eff // 2, sub))

    Mp = _round_up(M, tm_eff)
    m_tiles = Mp // tm_eff
    k_tiles = d_ff // tk_eff                      # tk_eff divides (or equals) d_ff

    x2 = x.reshape(M, d_model)
    if Mp != M:
        # Row padding only touches activations; weights are never padded.
        x2 = jnp.pad(x2, ((0, Mp - M), (0, 0)))
    b1_2 = b1.reshape(1, d_ff)
    b2_2 = b2.reshape(1, d_model)

    # VMEM limit from the actual tile footprint (+ compiler headroom), capped
    # just below physical per-core VMEM.
    acc_flag = need_acc and k_tiles > 1
    fp = footprint(tm_eff, tk_eff, acc_flag)
    vmem_limit = int(min(max(fp + (8 << 20), 32 << 20), int(vmem_cap * 0.92)))

    # Cost estimate reflecting actual traffic (weights re-streamed per m-tile
    # on the streaming path).
    weight_bytes = (w1.size + b1.size + w2.size + b2.size) * w_isz
    weight_passes = m_tiles if k_tiles > 1 else 1
    cost = pl.CostEstimate(
        flops=4 * Mp * d_model * d_ff,
        transcendentals=0,
        bytes_accessed=(Mp * d_model * x_isz + Mp * d_model * out_isz
                        + weight_bytes * weight_passes))

    if k_tiles == 1:
        grid = (m_tiles,)
        in_specs = [
            pl.BlockSpec((tm_eff, d_model), lambda i: (i, 0)),   # x rows
            pl.BlockSpec((d_model, tk_eff), lambda i: (0, 0)),   # W1 (resident)
            pl.BlockSpec((1, tk_eff),       lambda i: (0, 0)),   # b1
            pl.BlockSpec((tk_eff, d_model), lambda i: (0, 0)),   # W2 (resident)
            pl.BlockSpec((1, d_model),      lambda i: (0, 0)),   # b2
        ]
        out_specs = pl.BlockSpec((tm_eff, d_model), lambda i: (i, 0))
        kernel = _ffn_kernel_fused
        scratch_shapes = []
        dim_sem = ("parallel",)
    else:
        grid = (m_tiles, k_tiles)
        in_specs = [
            pl.BlockSpec((tm_eff, d_model), lambda i, k: (i, 0)),  # x rows
            pl.BlockSpec((d_model, tk_eff), lambda i, k: (0, k)),  # W1 slab
            pl.BlockSpec((1, tk_eff),       lambda i, k: (0, k)),  # b1 slab
            pl.BlockSpec((tk_eff, d_model), lambda i, k: (k, 0)),  # W2 slab
            pl.BlockSpec((1, d_model),      lambda i, k: (0, 0)),  # b2
        ]
        out_specs = pl.BlockSpec((tm_eff, d_model), lambda i, k: (i, 0))
        dim_sem = ("parallel", "arbitrary")
        if out_dtype == jnp.float32:
            kernel = _ffn_kernel_acc_out       # accumulate into o_ref directly
            scratch_shapes = []
        else:
            kernel = _ffn_kernel_acc_scratch   # f32 scratch for bf16 output
            scratch_shapes = [pltpu.VMEM((tm_eff, d_model), jnp.float32)]

    out = pl.pallas_call(
        kernel,
        out_shape=jax.ShapeDtypeStruct((Mp, d_model), out_dtype),
        grid=grid,
        in_specs=in_specs,
        out_specs=out_specs,
        scratch_shapes=scratch_shapes,
        compiler_params=pltpu.CompilerParams(
            dimension_semantics=dim_sem,
            vmem_limit_bytes=vmem_limit),
        cost_estimate=cost,
    )(x2, w1, b1_2, w2, b2_2)

    if Mp != M:
        out = out[:M]
    return out.reshape(B, S, d_model)


def init_params(key, d_model, d_ff, dtype=jnp.float32):
    """Deterministic init mimicking nn.Linear (uniform(-1/sqrt(fan_in), +)).
    Weights stored pre-transposed relative to PyTorch: [d_in, d_out]."""
    k1, k2, k3, k4 = jax.random.split(key, 4)
    lim1 = 1.0 / (d_model ** 0.5)
    lim2 = 1.0 / (d_ff ** 0.5)
    w1 = jax.random.uniform(k1, (d_model, d_ff), dtype, -lim1, lim1)
    b1 = jax.random.uniform(k2, (d_ff,), dtype, -lim1, lim1)
    w2 = jax.random.uniform(k3, (d_ff, d_model), dtype, -lim2, lim2)
    b2 = jax.random.uniform(k4, (d_model,), dtype, -lim2, lim2)
    return w1, b1, w2, b2


if __name__ == "__main__":
    # Small, lane-dense shapes (d_model multiple of 128) that still exercise
    # all kernel variants: M = 256 rows, d_ff = 512.
    B, S, d_model, d_ff = 2, 128, 128, 512

    key = jax.random.PRNGKey(0)
    kx, kp = jax.random.split(key)
    x = jax.random.normal(kx, (B, S, d_model), jnp.float32)
    w1, b1, w2, b2 = init_params(kp, d_model, d_ff, jnp.float32)

    ref = jnp.maximum(x @ w1 + b1, 0.0) @ w2 + b2

    # 1) Auto-tuned path (weight-resident fast path at these sizes).
    out = jax.block_until_ready(positionwise_ffn(x, w1, b1, w2, b2))
    assert out.shape == (B, S, d_model)
    assert jnp.allclose(out, ref, atol=2e-4, rtol=2e-4), float(
        jnp.max(jnp.abs(out - ref)))

    # 2) Streamed-weight path, f32 output (accumulates directly into the
    #    VMEM-resident output block, no scratch) — exercises the 2-D grid.
    out_s = jax.block_until_ready(
        positionwise_ffn(x, w1, b1, w2, b2, tm=128, tk=256, force_stream=True))
    assert jnp.allclose(out_s, ref, atol=2e-4, rtol=2e-4), float(
        jnp.max(jnp.abs(out_s - ref)))

    # 3) bf16 storage (recommended on v5e/v6e/v7x) through the streamed path
    #    with the f32 scratch accumulator.
    out_b = jax.block_until_ready(positionwise_ffn(
        x.astype(jnp.bfloat16), w1.astype(jnp.bfloat16),
        b1.astype(jnp.bfloat16), w2.astype(jnp.bfloat16),
        b2.astype(jnp.bfloat16), tm=128, tk=128, force_stream=True))
    assert out_b.shape == (B, S, d_model)
    assert jnp.allclose(out_b.astype(jnp.float32), ref, atol=0.12, rtol=0.1)

    print("KERNEL_OK")
</pallas_src>

<mosaic_0001>
module attributes {stable_mosaic.version = 11 : i64} {
  func.func @_ffn_kernel_fused(%arg0: i32, %arg1: memref<256x128xf32, #tpu.memory_space<vmem>>, %arg2: memref<128x512xf32, #tpu.memory_space<vmem>>, %arg3: memref<1x512xf32, #tpu.memory_space<vmem>>, %arg4: memref<512x128xf32, #tpu.memory_space<vmem>>, %arg5: memref<1x128xf32, #tpu.memory_space<vmem>>, %arg6: memref<256x128xf32, #tpu.memory_space<vmem>>) attributes {dimension_semantics = [#tpu.dimension_semantics<parallel>], iteration_bounds = array<i64: 1>, scalar_prefetch = 0 : i64, scratch_operands = 0 : i64, tpu.core_type = #tpu.core_type<tc>, window_params = [{transform_indices = @transform_0, window_bounds = array<i64: 256, 128>}, {pipeline_mode = #tpu.pipeline_mode<synchronous>, transform_indices = @transform_1, window_bounds = array<i64: 128, 512>}, {pipeline_mode = #tpu.pipeline_mode<synchronous>, transform_indices = @transform_2, window_bounds = array<i64: 1, 512>}, {pipeline_mode = #tpu.pipeline_mode<synchronous>, transform_indices = @transform_3, window_bounds = array<i64: 512, 128>}, {pipeline_mode = #tpu.pipeline_mode<synchronous>, transform_indices = @transform_4, window_bounds = array<i64: 1, 128>}, {transform_indices = @transform_5, window_bounds = array<i64: 256, 128>}]} {
    %c0 = arith.constant 0 : index
    %c0_0 = arith.constant 0 : index
    %0 = vector.load %arg1[%c0, %c0_0] : memref<256x128xf32, #tpu.memory_space<vmem>>, vector<256x128xf32>
    %c0_1 = arith.constant 0 : index
    %c0_2 = arith.constant 0 : index
    %1 = vector.load %arg2[%c0_1, %c0_2] : memref<128x512xf32, #tpu.memory_space<vmem>>, vector<128x512xf32>
    %cst = arith.constant dense<0.000000e+00> : vector<256x512xf32>
    %2 = tpu.matmul %0, %1, %cst {dimension_numbers = #tpu.dot_dimension_numbers<[1], [0], [0], [1], [0, 0, 1, 1], [], []>} : vector<256x128xf32>, vector<128x512xf32>, vector<256x512xf32> -> vector<256x512xf32>
    %c0_3 = arith.constant 0 : index
    %c0_4 = arith.constant 0 : index
    %3 = vector.load %arg3[%c0_3, %c0_4] : memref<1x512xf32, #tpu.memory_space<vmem>>, vector<1x512xf32>
    %4 = vector.broadcast %3 : vector<1x512xf32> to vector<256x512xf32>
    %5 = arith.addf %2, %4 : vector<256x512xf32>
    %cst_5 = arith.constant 0.000000e+00 : f32
    %6 = vector.broadcast %cst_5 : f32 to vector<256x512xf32>
    %7 = arith.maximumf %5, %6 : vector<256x512xf32>
    %c0_6 = arith.constant 0 : index
    %c0_7 = arith.constant 0 : index
    %8 = vector.load %arg4[%c0_6, %c0_7] : memref<512x128xf32, #tpu.memory_space<vmem>>, vector<512x128xf32>
    %cst_8 = arith.constant dense<0.000000e+00> : vector<256x128xf32>
    %9 = tpu.matmul %7, %8, %cst_8 {dimension_numbers = #tpu.dot_dimension_numbers<[1], [0], [0], [1], [0, 0, 1, 1], [], []>} : vector<256x512xf32>, vector<512x128xf32>, vector<256x128xf32> -> vector<256x128xf32>
    %c0_9 = arith.constant 0 : index
    %c0_10 = arith.constant 0 : index
    %10 = vector.load %arg5[%c0_9, %c0_10] : memref<1x128xf32, #tpu.memory_space<vmem>>, vector<1x128xf32>
    %11 = vector.broadcast %10 : vector<1x128xf32> to vector<256x128xf32>
    %12 = arith.addf %9, %11 : vector<256x128xf32>
    %c0_11 = arith.constant 0 : index
    %c0_12 = arith.constant 0 : index
    %13 = vector.load %arg6[%c0_11, %c0_12] : memref<256x128xf32, #tpu.memory_space<vmem>>, vector<256x128xf32>
    tpu.vector_store %arg6[%c0_11, %c0_12], %12 {strides = array<i32>} : memref<256x128xf32, #tpu.memory_space<vmem>>, vector<256x128xf32>,
    return
  }
  func.func @transform_0(%arg0: i32) -> (i32, i32) {
    %c0_i32 = arith.constant 0 : i32
    %c0_i32_0 = arith.constant 0 : i32
    return %arg0, %c0_i32 : i32, i32
  }
  func.func @transform_1(%arg0: i32) -> (i32, i32) {
    %c0_i32 = arith.constant 0 : i32
    %c0_i32_0 = arith.constant 0 : i32
    %c0_i32_1 = arith.constant 0 : i32
    return %c0_i32, %c0_i32_0 : i32, i32
  }
  func.func @transform_2(%arg0: i32) -> (i32, i32) {
    %c0_i32 = arith.constant 0 : i32
    %c0_i32_0 = arith.constant 0 : i32
    %c0_i32_1 = arith.constant 0 : i32
    return %c0_i32, %c0_i32_0 : i32, i32
  }
  func.func @transform_3(%arg0: i32) -> (i32, i32) {
    %c0_i32 = arith.constant 0 : i32
    %c0_i32_0 = arith.constant 0 : i32
    %c0_i32_1 = arith.constant 0 : i32
    return %c0_i32, %c0_i32_0 : i32, i32
  }
  func.func @transform_4(%arg0: i32) -> (i32, i32) {
    %c0_i32 = arith.constant 0 : i32
    %c0_i32_0 = arith.constant 0 : i32
    %c0_i32_1 = arith.constant 0 : i32
    return %c0_i32, %c0_i32_0 : i32, i32
  }
  func.func @transform_5(%arg0: i32) -> (i32, i32) {
    %c0_i32 = arith.constant 0 : i32
    %c0_i32_0 = arith.constant 0 : i32
    return %arg0, %c0_i32 : i32, i32
  }
}

</mosaic_0001>

<bundles_post_ra>
// kernel: positionwise_ffn.1
= control target key start
LH: loop header
LB: loop body
LE: loop exit
PB: predicated region body
PF: predicated region fallthrough
CT: control target
= control target key end

     0   :  { %10 = vsyncpa [#allocation3], 0  ;;  %s2091_s0 = inlined_call_operand.hbm [shape: f32[256,128], index: 0, kind: input, shape index: {}]   ;;  %s2092_s1 = inlined_call_operand.hbm [shape: f32[128,512], index: 1, kind: input, shape index: {}]   ;;  %s2093_s2 = inlined_call_operand.vmem [shape: f32[1,512], index: 2, kind: input, shape index: {}]   ;;  %s2094_s3 = inlined_call_operand.hbm [shape: f32[512,128], index: 3, kind: input, shape index: {}]   ;;  %s2095_s4 = inlined_call_operand.vmem [shape: f32[1,128], index: 4, kind: input, shape index: {}]   ;;  %s2096_s5 = inlined_call_operand.hbm [shape: f32[256,128], index: 5, kind: output, shape index: {}]  }
   0x1   :  { %11 = vsyncpa [#allocation6], 0 }
   0x2   :  { %12 = vsyncpa [#allocation4], 0  ;;  %s1722_s18 = smov [#allocation5]   ;;  %s1628_s22 = scalar_lea.hbm %s2092_s1, 8192 }
   0x3   :  { %s30_s19 = sshll.u32 %s1722_s18, 4  ;;  %p1629_p0 = scmp.ne.s32.totalorder %s2092_s1, %s1628_s22  ;;  %s31_s19 = int_to_ptr.vmem [resolvable:$true] %s30_s19 }
   0x4   :  { %p1632_p1 = scmp.lt.u32.totalorder %s1628_s22, %s2092_s1 }
   0x6   :  { %p1634_p2 = pnand %p1632_p1, %p1629_p0 }
   0x8   :  { %1637 = shalt.err (!%p1634_p2)
}
   0x9   :  { %s1638_s27 = scalar_lea.vmem %s31_s19, 8192  ;;  %p1643_p4 = scmp.lt.s32.totalorder %s31_s19, %s31_s19 }
   0xa   :  { %p1639_p3 = scmp.ne.s32.totalorder %s31_s19, %s1638_s27  ;;  %p1644_p5 = scmp.lt.s32.totalorder %s1638_s27, %s1638_s27 }
   0xc   :  { %p1645_p6 = por %p1644_p5, %p1643_p4 }
   0xe   :  { %p1646_p7 = pnand %p1645_p6, %p1639_p3 }
  0x10   :  { %1649 = shalt.err (!%p1646_p7)
}
  0x11   :  { %s1723_s28 = smov 512   ;;  %s1724_s29 = smov 32  }
  0x12   :  { %36 = dma.hbm_to_vmem [thread:$0]  %s2092_s1, 8192, %s31_s19, [#allocation6], %s1723_s28, %s1723_s28, %s1724_s29  }
  0x13   :  { %s1725_s7 = smov [#allocation2]   ;;  %s1650_s11 = scalar_lea.hbm %s2091_s0, 4096 }
  0x14   :  { %s18_s8 = sshll.u32 %s1725_s7, 4  ;;  %p1651_p8 = scmp.ne.s32.totalorder %s2091_s0, %s1650_s11  ;;  %s19_s8 = int_to_ptr.vmem [resolvable:$true] %s18_s8 }
  0x15   :  { %p1654_p9 = scmp.lt.u32.totalorder %s1650_s11, %s2091_s0 }
  0x17   :  { %p1656_p10 = pnand %p1654_p9, %p1651_p8 }
  0x19   :  { %1659 = shalt.err (!%p1656_p10)
}
  0x1a   :  { %s1660_s16 = scalar_lea.vmem %s19_s8, 4096  ;;  %p1665_p12 = scmp.lt.s32.totalorder %s19_s8, %s19_s8 }
  0x1b   :  { %p1661_p11 = scmp.ne.s32.totalorder %s19_s8, %s1660_s16  ;;  %p1666_p13 = scmp.lt.s32.totalorder %s1660_s16, %s1660_s16 }
  0x1d   :  { %p1667_p0 = por %p1666_p13, %p1665_p12 }
  0x1f   :  { %p1668_p1 = pnand %p1667_p0, %p1661_p11 }
  0x21   :  { %1671 = shalt.err (!%p1668_p1)
}
  0x22   :  { %s1726_s1 = smov 128   ;;  %s1727_s17 = smov 8  }
  0x23   :  { %24 = dma.hbm_to_vmem [thread:$0]  %s2091_s0, 4096, %s19_s8, [#allocation3], %s1726_s1, %s1726_s1, %s1727_s17  }
  0x24   :  { %s1728_s20 = smov [#allocation7]   ;;  %s1672_s24 = scalar_lea.hbm %s2094_s3, 8192 }
  0x25   :  { %s44_s21 = sshll.u32 %s1728_s20, 4  ;;  %p1673_p2 = scmp.ne.s32.totalorder %s2094_s3, %s1672_s24  ;;  %s45_s21 = int_to_ptr.vmem [resolvable:$true] %s44_s21 }
  0x26   :  { %p1676_p3 = scmp.lt.u32.totalorder %s1672_s24, %s2094_s3 }
  0x28   :  { %p1678_p4 = pnand %p1676_p3, %p1673_p2 }
  0x2a   :  { %1681 = shalt.err (!%p1678_p4)
}
  0x2b   :  { %s1682_s29 = scalar_lea.vmem %s45_s21, 8192  ;;  %p1687_p6 = scmp.lt.s32.totalorder %s45_s21, %s45_s21 }
  0x2c   :  { %p1683_p5 = scmp.ne.s32.totalorder %s45_s21, %s1682_s29  ;;  %p1688_p7 = scmp.lt.s32.totalorder %s1682_s29, %s1682_s29 }
  0x2e   :  { %p1689_p8 = por %p1688_p7, %p1687_p6 }
  0x30   :  { %p1690_p9 = pnand %p1689_p8, %p1683_p5 }
  0x32   :  { %1693 = shalt.err (!%p1690_p9)
}
  0x33   :  { %50 = dma.hbm_to_vmem [thread:$0]  %s2094_s3, 8192, %s45_s21, [#allocation6], %s1726_s1, %s1726_s1, %s1727_s17  }
  0x34   :  { %1716 = dma.done.wait [#allocation3], 4096  }
  0x35   :  { %1717 = vsyncadd [#allocation3], 4294963200 }
  0x36   :  { %1718 = dma.done.wait [#allocation6], 16384  }
  0x37   :  { %1719 = vsyncadd [#allocation6], 4294950912  ;;  %v1729_v0 = vmov 0.0   ;;  %v95_v1 = vld [vmem:[#allocation5 + $0x8] sm:$0xff]  ;;  %v97_v3 = vld [vmem:[#allocation5 + $0x18] sm:$0xff] }
  0x38   :  { %244 = vmatprep.mubr.f32.mxu0 %v1729_v0  ;;  %501 = vmatprep.mubr.f32.mxu1 %v1729_v0  ;;  %v99_v2 = vld [vmem:[#allocation5 + $0x28] sm:$0xff]  ;;  %v101_v5 = vld [vmem:[#allocation5 + $0x38] sm:$0xff]  ;;  %v94_v6 = vld [vmem:[#allocation5] sm:$0xff] }
  0x39   :  { %v1394_v4 = vpack.c.bf16 %v99_v2, %v95_v1  ;;  %v98_v7 = vld [vmem:[#allocation5 + $0x20] sm:$0xff]  ;;  %v1426_v8 = vpack.c.bf16 %v101_v5, %v97_v3  ;;  %v96_v10 = vld [vmem:[#allocation5 + $0x10] sm:$0xff]  ;;  %v103_v12 = vld [vmem:[#allocation5 + $0x48] sm:$0xff] }
  0x3a   :  { %v1396_v9 = vpack.c.bf16 %v98_v7, %v94_v6  ;;  %v100_v11 = vld [vmem:[#allocation5 + $0x30] sm:$0xff]  ;;  %v107_v14 = vld [vmem:[#allocation5 + $0x68] sm:$0xff]  ;;  %v105_v15 = vld [vmem:[#allocation5 + $0x58] sm:$0xff] }
  0x3b   :  { %1395 = vmatprep.subr.bf16.mxu0 %v1394_v4  ;;  %v1428_v13 = vpack.c.bf16 %v100_v11, %v96_v10  ;;  %v109_v16 = vld [vmem:[#allocation5 + $0x78] sm:$0xff]  ;;  %1427 = vmatprep.subr.bf16.mxu1 %v1426_v8  ;;  %v1398_v17 = vpack.c.bf16 %v107_v14, %v103_v12  ;;  %v102_v19 = vld [vmem:[#allocation5 + $0x40] sm:$0xff]  ;;  %v104_v21 = vld [vmem:[#allocation5 + $0x50] sm:$0xff] }
  0x3c   :  { %1397 = vmatpush1.bf16.msra.mxu0 %v1396_v9  ;;  %v1430_v18 = vpack.c.bf16 %v109_v16, %v105_v15  ;;  %v106_v20 = vld [vmem:[#allocation5 + $0x60] sm:$0xff]  ;;  %v108_v23 = vld [vmem:[#allocation5 + $0x70] sm:$0xff]  ;;  %v111_v24 = vld [vmem:[#allocation5 + $0x88] sm:$0xff] }
  0x3d   :  { %1429 = vmatpush1.bf16.msra.mxu1 %v1428_v13  ;;  %v1400_v22 = vpack.c.bf16 %v106_v20, %v102_v19  ;;  %v115_v25 = vld [vmem:[#allocation5 + $0xa8] sm:$0xff]  ;;  %1399 = vmatprep.subr.bf16.mxu0 %v1398_v17  ;;  %v1432_v26 = vpack.c.bf16 %v108_v23, %v104_v21  ;;  %v113_v28 = vld [vmem:[#allocation5 + $0x98] sm:$0xff]  ;;  %v110_v30 = vld [vmem:[#allocation5 + $0x80] sm:$0xff] }
  0x3e   :  { %1431 = vmatprep.subr.bf16.mxu1 %v1430_v18  ;;  %v1402_v27 = vpack.c.bf16 %v115_v25, %v111_v24  ;;  %v117_v29 = vld [vmem:[#allocation5 + $0xb8] sm:$0xff]  ;;  %v114_v32 = vld [vmem:[#allocation5 + $0xa0] sm:$0xff]  ;;  %v112_v33 = vld [vmem:[#allocation5 + $0x90] sm:$0xff] }
  0x3f   :  { %v1434_v31 = vpack.c.bf16 %v117_v29, %v113_v28  ;;  %v116_v34 = vld [vmem:[#allocation5 + $0xb0] sm:$0xff]  ;;  %v1404_v35 = vpack.c.bf16 %v114_v32, %v110_v30  ;;  %v119_v36 = vld [vmem:[#allocation5 + $0xc8] sm:$0xff]  ;;  %v121_v38 = vld [vmem:[#allocation5 + $0xd8] sm:$0xff] }
  0x40   :  { %1401 = vmatpush1.bf16.msra.mxu0 %v1400_v22  ;;  %v123_v37 = vld [vmem:[#allocation5 + $0xe8] sm:$0xff]  ;;  %v1436_v39 = vpack.c.bf16 %v116_v34, %v112_v33  ;;  %v125_v41 = vld [vmem:[#allocation5 + $0xf8] sm:$0xff]  ;;  %v118_v42 = vld [vmem:[#allocation5 + $0xc0] sm:$0xff] }
  0x41   :  { %1433 = vmatpush1.bf16.msra.mxu1 %v1432_v26  ;;  %1403 = vmatprep.subr.bf16.mxu0 %v1402_v27  ;;  %v1406_v40 = vpack.c.bf16 %v123_v37, %v119_v36  ;;  %v122_v43 = vld [vmem:[#allocation5 + $0xe0] sm:$0xff]  ;;  %v1438_v44 = vpack.c.bf16 %v125_v41, %v121_v38  ;;  %v120_v45 = vld [vmem:[#allocation5 + $0xd0] sm:$0xff]  ;;  %v127_v47 = vld [vmem:[#allocation5 + $0x108] sm:$0xff] }
  0x42   :  { %1435 = vmatprep.subr.bf16.mxu1 %v1434_v31  ;;  %v124_v46 = vld [vmem:[#allocation5 + $0xf0] sm:$0xff]  ;;  %v131_v48 = vld [vmem:[#allocation5 + $0x128] sm:$0xff]  ;;  %v129_v49 = vld [vmem:[#allocation5 + $0x118] sm:$0xff]  ;;  %v1408_v51 = vpack.c.bf16 %v122_v43, %v118_v42 }
  0x43   :  { %v133_v50 = vld [vmem:[#allocation5 + $0x138] sm:$0xff]  ;;  %v1440_v52 = vpack.c.bf16 %v124_v46, %v120_v45  ;;  %v1410_v53 = vpack.c.bf16 %v131_v48, %v127_v47  ;;  %v126_v54 = vld [vmem:[#allocation5 + $0x100] sm:$0xff]  ;;  %v128_v56 = vld [vmem:[#allocation5 + $0x110] sm:$0xff] }
  0x44   :  { %1405 = vmatpush1.bf16.msra.mxu0 %v1404_v35  ;;  %v130_v55 = vld [vmem:[#allocation5 + $0x120] sm:$0xff]  ;;  %v1442_v57 = vpack.c.bf16 %v133_v50, %v129_v49  ;;  %v132_v58 = vld [vmem:[#allocation5 + $0x130] sm:$0xff]  ;;  %v135_v59 = vld [vmem:[#allocation5 + $0x148] sm:$0xff] }
  0x45   :  { %1437 = vmatpush1.bf16.msra.mxu1 %v1436_v39  ;;  %1407 = vmatprep.subr.bf16.mxu0 %v1406_v40  ;;  %v139_v60 = vld [vmem:[#allocation5 + $0x168] sm:$0xff]  ;;  %v137_v61 = vld [vmem:[#allocation5 + $0x158] sm:$0xff]  ;;  %v1412_v63 = vpack.c.bf16 %v130_v55, %v126_v54  ;;  %v1444_v1 = vpack.c.bf16 %v132_v58, %v128_v56  ;;  %v134_v3 = vld [vmem:[#allocation5 + $0x140] sm:$0xff]  ;;  %v1730_v40 = vmov 0.0|0.0  }
  0x46   :  { %1439 = vmatprep.subr.bf16.mxu1 %v1438_v44  ;;  %v141_v62 = vld [vmem:[#allocation5 + $0x178] sm:$0xff]  ;;  %v1414_v2 = vpack.c.bf16 %v139_v60, %v135_v59  ;;  %v138_v4 = vld [vmem:[#allocation5 + $0x160] sm:$0xff]  ;;  %v136_v5 = vld [vmem:[#allocation5 + $0x150] sm:$0xff] }
  0x47   :  { %v1446_v6 = vpack.c.bf16 %v141_v62, %v137_v61  ;;  %v140_v7 = vld [vmem:[#allocation5 + $0x170] sm:$0xff]  ;;  %v143_v8 = vld [vmem:[#allocation5 + $0x188] sm:$0xff]  ;;  %v145_v10 = vld [vmem:[#allocation5 + $0x198] sm:$0xff]  ;;  %v1416_v12 = vpack.c.bf16 %v138_v4, %v134_v3 }
  0x48   :  { %1409 = vmatpush1.bf16.msra.mxu0 %v1408_v51  ;;  %v147_v9 = vld [vmem:[#allocation5 + $0x1a8] sm:$0xff]  ;;  %v149_v11 = vld [vmem:[#allocation5 + $0x1b8] sm:$0xff]  ;;  %v1448_v13 = vpack.c.bf16 %v140_v7, %v136_v5  ;;  %v142_v15 = vld [vmem:[#allocation5 + $0x180] sm:$0xff] }
  0x49   :  { %1441 = vmatpush1.bf16.msra.mxu1 %v1440_v52  ;;  %1411 = vmatprep.subr.bf16.mxu0 %v1410_v53  ;;  %v1418_v14 = vpack.c.bf16 %v147_v9, %v143_v8  ;;  %v146_v16 = vld [vmem:[#allocation5 + $0x1a0] sm:$0xff]  ;;  %v144_v17 = vld [vmem:[#allocation5 + $0x190] sm:$0xff]  ;;  %v1450_v18 = vpack.c.bf16 %v149_v11, %v145_v10  ;;  %v151_v20 = vld [vmem:[#allocation5 + $0x1c8] sm:$0xff] }
  0x4a   :  { %1443 = vmatprep.subr.bf16.mxu1 %v1442_v57  ;;  %v148_v19 = vld [vmem:[#allocation5 + $0x1b0] sm:$0xff]  ;;  %v155_v21 = vld [vmem:[#allocation5 + $0x1e8] sm:$0xff]  ;;  %v153_v22 = vld [vmem:[#allocation5 + $0x1d8] sm:$0xff]  ;;  %v1420_v24 = vpack.c.bf16 %v146_v16, %v142_v15 }
  0x4b   :  { %v157_v23 = vld [vmem:[#allocation5 + $0x1f8] sm:$0xff]  ;;  %v1452_v25 = vpack.c.bf16 %v148_v19, %v144_v17  ;;  %v1422_v26 = vpack.c.bf16 %v155_v21, %v151_v20  ;;  %v150_v27 = vld [vmem:[#allocation5 + $0x1c0] sm:$0xff]  ;;  %v152_v30 = vld [vmem:[#allocation5 + $0x1d0] sm:$0xff] }
  0x4c   :  { %1413 = vmatpush1.bf16.msra.mxu0 %v1412_v63  ;;  %v154_v28 = vld [vmem:[#allocation5 + $0x1e0] sm:$0xff]  ;;  %v1454_v29 = vpack.c.bf16 %v157_v23, %v153_v22  ;;  %v156_v31 = vld [vmem:[#allocation5 + $0x1f0] sm:$0xff]  ;;  %v823_v35 = vld [vmem:[#allocation7 + $0x8] sm:$0xff] }
  0x4d   :  { %1445 = vmatpush1.bf16.msra.mxu1 %v1444_v1  ;;  %1415 = vmatprep.subr.bf16.mxu0 %v1414_v2  ;;  %v1424_v32 = vpack.c.bf16 %v154_v28, %v150_v27  ;;  %v1456_v33 = vpack.c.bf16 %v156_v31, %v152_v30  ;;  %v822_v34 = vld [vmem:[#allocation7] sm:$0xff]  ;;  %v855_v37 = vld [vmem:[#allocation7 + $0x108] sm:$0xff]  ;;  %v824_v42 = vld [vmem:[#allocation7 + $0x10] sm:$0xff] }
  0x4e   :  { %1447 = vmatprep.subr.bf16.mxu1 %v1446_v6  ;;  %v854_v36 = vld [vmem:[#allocation7 + $0x100] sm:$0xff]  ;;  %v1459_v39 = vpack.c.bf16 %v823_v35, %v822_v34  ;;  %v825_v43 = vld [vmem:[#allocation7 + $0x18] sm:$0xff]  ;;  %v856_v44 = vld [vmem:[#allocation7 + $0x110] sm:$0xff] }
  0x4f   :  { %v62_v38 = vld [vmem:[#allocation2] sm:$0xff]  ;;  %v1507_v41 = vpack.c.bf16 %v855_v37, %v854_v36  ;;  %v857_v45 = vld [vmem:[#allocation7 + $0x118] sm:$0xff]  ;;  %v63_v46 = vld [vmem:[#allocation2 + $0x8] sm:$0xff]  ;;  %v1462_v47 = vpack.c.bf16 %v825_v43, %v824_v42 }
  0x50   :  { %1417 = vmatpush1.bf16.msra.mxu0 %v1416_v12  ;;  %v1510_v48 = vpack.c.bf16 %v857_v45, %v856_v44  ;;  %v826_v49 = vld [vmem:[#allocation7 + $0x20] sm:$0xff]  ;;  %v827_v50 = vld [vmem:[#allocation7 + $0x28] sm:$0xff]  ;;  %v64_v53 = vld [vmem:[#allocation2 + $0x10] sm:$0xff] }
  0x51   :  { %1449 = vmatpush1.bf16.msra.mxu1 %v1448_v13  ;;  %1419 = vmatprep.subr.bf16.mxu0 %v1418_v14  ;;  %v858_v51 = vld [vmem:[#allocation7 + $0x120] sm:$0xff]  ;;  %v859_v52 = vld [vmem:[#allocation7 + $0x128] sm:$0xff]  ;;  %v1465_v54 = vpack.c.bf16 %v827_v50, %v826_v49  ;;  %v828_v56 = vld [vmem:[#allocation7 + $0x30] sm:$0xff] }
  0x52   :  { %1451 = vmatprep.subr.bf16.mxu1 %v1450_v18  ;;  %v1513_v55 = vpack.c.bf16 %v859_v52, %v858_v51  ;;  %v829_v57 = vld [vmem:[#allocation7 + $0x38] sm:$0xff]  ;;  %v860_v58 = vld [vmem:[#allocation7 + $0x130] sm:$0xff]  ;;  %v830_v63 = vld [vmem:[#allocation7 + $0x40] sm:$0xff] }
  0x53   :  { %v861_v59 = vld [vmem:[#allocation7 + $0x138] sm:$0xff]  ;;  %v1468_v61 = vpack.c.bf16 %v829_v57, %v828_v56  ;;  %v831_v1 = vld [vmem:[#allocation7 + $0x48] sm:$0xff]  ;;  %v862_v2 = vld [vmem:[#allocation7 + $0x140] sm:$0xff] }
  0x54   :  { %1421 = vmatpush1.bf16.msra.mxu0 %v1420_v24  ;;  %v65_v60 = vld [vmem:[#allocation2 + $0x18] sm:$0xff]  ;;  %v1516_v62 = vpack.c.bf16 %v861_v59, %v860_v58  ;;  %v863_v3 = vld [vmem:[#allocation7 + $0x148] sm:$0xff]  ;;  %v66_v4 = vld [vmem:[#allocation2 + $0x20] sm:$0xff]  ;;  %v1471_v5 = vpack.c.bf16 %v831_v1, %v830_v63 }
  0x55   :  { %1453 = vmatpush1.bf16.msra.mxu1 %v1452_v25  ;;  %1423 = vmatprep.subr.bf16.mxu0 %v1422_v26  ;;  %v1519_v6 = vpack.c.bf16 %v863_v3, %v862_v2  ;;  %v832_v7 = vld [vmem:[#allocation7 + $0x50] sm:$0xff]  ;;  %v833_v8 = vld [vmem:[#allocation7 + $0x58] sm:$0xff]  ;;  %v67_v11 = vld [vmem:[#allocation2 + $0x28] sm:$0xff] }
  0x56   :  { %1455 = vmatprep.subr.bf16.mxu1 %v1454_v29  ;;  %v864_v9 = vld [vmem:[#allocation7 + $0x150] sm:$0xff]  ;;  %v865_v10 = vld [vmem:[#allocation7 + $0x158] sm:$0xff]  ;;  %v1474_v12 = vpack.c.bf16 %v833_v8, %v832_v7  ;;  %v834_v14 = vld [vmem:[#allocation7 + $0x60] sm:$0xff] }
  0x57   :  { %v1522_v13 = vpack.c.bf16 %v865_v10, %v864_v9  ;;  %v835_v15 = vld [vmem:[#allocation7 + $0x68] sm:$0xff]  ;;  %v866_v16 = vld [vmem:[#allocation7 + $0x160] sm:$0xff]  ;;  %v68_v18 = vld [vmem:[#allocation2 + $0x30] sm:$0xff] }
  0x58   :  { %1425 = vmatpush1.bf16.msra.mxu0 %v1424_v32  ;;  %v867_v17 = vld [vmem:[#allocation7 + $0x168] sm:$0xff]  ;;  %v1477_v19 = vpack.c.bf16 %v835_v15, %v834_v14  ;;  %v836_v21 = vld [vmem:[#allocation7 + $0x70] sm:$0xff]  ;;  %v837_v22 = vld [vmem:[#allocation7 + $0x78] sm:$0xff] }
  0x59   :  { %1457 = vmatpush1.bf16.msra.mxu1 %v1456_v33  ;;  %1506 = vmatprep.subr.bf16.mxu0 %v1730_v40  ;;  %v1525_v20 = vpack.c.bf16 %v867_v17, %v866_v16  ;;  %v868_v23 = vld [vmem:[#allocation7 + $0x170] sm:$0xff]  ;;  %v869_v24 = vld [vmem:[#allocation7 + $0x178] sm:$0xff]  ;;  %v1480_v26 = vpack.c.bf16 %v837_v22, %v836_v21  ;;  %v838_v28 = vld [vmem:[#allocation7 + $0x80] sm:$0xff] }
  0x5a   :  { %1458 = vmatprep.subr.bf16.mxu1 %v1730_v40  ;;  %v69_v25 = vld [vmem:[#allocation2 + $0x38] sm:$0xff]  ;;  %v1528_v27 = vpack.c.bf16 %v869_v24, %v868_v23  ;;  %v839_v29 = vld [vmem:[#allocation7 + $0x88] sm:$0xff]  ;;  %v870_v30 = vld [vmem:[#allocation7 + $0x180] sm:$0xff] }
  0x5b   :  { %245 = vmatmul.mubr.f32.vlgmr.msra.gmra.mrb[0].mxu0 %v62_v38  ;;  %v871_v31 = vld [vmem:[#allocation7 + $0x188] sm:$0xff]  ;;  %v70_v32 = vld [vmem:[#allocation2 + $0x40] sm:$0xff]  ;;  %v1483_v33 = vpack.c.bf16 %v839_v29, %v838_v28  ;;  %v840_v35 = vld [vmem:[#allocation7 + $0x90] sm:$0xff] }
  0x5c   :  { %502 = vmatmul.mubr.f32.vlgmr.msra.gmra.mrb[0].mxu1 %v62_v38  ;;  %250 = vmatprep.mubr.f32.mxu0 %v1729_v0  ;;  %v1531_v34 = vpack.c.bf16 %v871_v31, %v870_v30  ;;  %v841_v36 = vld [vmem:[#allocation7 + $0x98] sm:$0xff]  ;;  %v872_v37 = vld [vmem:[#allocation7 + $0x190] sm:$0xff]  ;;  %v842_v43 = vld [vmem:[#allocation7 + $0xa0] sm:$0xff] }
  0x5d   :  { %507 = vmatprep.mubr.f32.mxu1 %v1729_v0  ;;  %1460 = vmatpush1.bf16.msra.mxu1 %v1459_v39  ;;  %v873_v38 = vld [vmem:[#allocation7 + $0x198] sm:$0xff]  ;;  %v71_v39 = vld [vmem:[#allocation2 + $0x48] sm:$0xff]  ;;  %v874_v45 = vld [vmem:[#allocation7 + $0x1a0] sm:$0xff] }
  0x5e   :  { %1508 = vmatpush1.bf16.msra.mxu0 %v1507_v41  ;;  %1461 = vmatprep.subr.bf16.mxu1 %v1730_v40  ;;  %v1486_v41 = vpack.c.bf16 %v841_v36, %v840_v35  ;;  %v1534_v42 = vpack.c.bf16 %v873_v38, %v872_v37  ;;  %v843_v44 = vld [vmem:[#allocation7 + $0xa8] sm:$0xff]  ;;  %v844_v50 = vld [vmem:[#allocation7 + $0xb0] sm:$0xff]  ;;  %v845_v51 = vld [vmem:[#allocation7 + $0xb8] sm:$0xff]  ;;  %v160_v37 = vlaneseq }
  0x5f   :  { %251 = vmatmul.mubr.f32.gmra.mrb[2].mxu0 %v63_v46  ;;  %1509 = vmatprep.subr.bf16.mxu0 %v1730_v40  ;;  %v876_v52 = vld [vmem:[#allocation7 + $0x1b0] sm:$0xff]  ;;  %v846_v57 = vld [vmem:[#allocation7 + $0xc0] sm:$0xff]  ;;  %v847_v58 = vld [vmem:[#allocation7 + $0xc8] sm:$0xff] }
  0x60   :  { %508 = vmatmul.mubr.f32.gmra.mrb[2].mxu1 %v63_v46  ;;  %256 = vmatprep.mubr.f32.mxu0 %v1729_v0  ;;  %v875_v46 = vld [vmem:[#allocation7 + $0x1a8] sm:$0xff]  ;;  %v878_v59 = vld [vmem:[#allocation7 + $0x1c0] sm:$0xff]  ;;  %v848_v1 = vld [vmem:[#allocation7 + $0xd0] sm:$0xff]  ;;  %v161_v38 = vshrl.u32 %v160_v37, 7 }
  0x61   :  { %513 = vmatprep.mubr.f32.mxu1 %v1729_v0  ;;  %1463 = vmatpush1.bf16.msra.mxu1 %v1462_v47  ;;  %v72_v47 = vld [vmem:[#allocation2 + $0x50] sm:$0xff]  ;;  %v1537_v49 = vpack.c.bf16 %v875_v46, %v874_v45  ;;  %v849_v2 = vld [vmem:[#allocation7 + $0xd8] sm:$0xff]  ;;  %v850_v8 = vld [vmem:[#allocation7 + $0xe0] sm:$0xff] }
  0x62   :  { %1511 = vmatpush1.bf16.msra.mxu0 %v1510_v48  ;;  %1464 = vmatprep.subr.bf16.mxu1 %v1730_v40  ;;  %v1489_v48 = vpack.c.bf16 %v843_v44, %v842_v43  ;;  %v880_v3 = vld [vmem:[#allocation7 + $0x1d0] sm:$0xff]  ;;  %v851_v9 = vld [vmem:[#allocation7 + $0xe8] sm:$0xff]  ;;  %v882_v10 = vld [vmem:[#allocation7 + $0x1e0] sm:$0xff]  ;;  %v166_v43 = vsub.s32 1, %v161_v38  ;;  %v174_v44 = vsub.s32 3, %v161_v38 }
  0x63   :  { %257 = vmatmul.mubr.f32.gmra.mrb[4].mxu0 %v64_v53  ;;  %1512 = vmatprep.subr.bf16.mxu0 %v1730_v40  ;;  %v852_v15 = vld [vmem:[#allocation7 + $0xf0] sm:$0xff]  ;;  %v853_v16 = vld [vmem:[#allocation7 + $0xf8] sm:$0xff]  ;;  %v82_v22 = vld [vmem:[#allocation2 + $0xa0] sm:$0xff] }
  0x64   :  { %514 = vmatmul.mubr.f32.gmra.mrb[4].mxu1 %v64_v53  ;;  %262 = vmatprep.mubr.f32.mxu0 %v1729_v0  ;;  %v877_v53 = vld [vmem:[#allocation7 + $0x1b8] sm:$0xff]  ;;  %v80_v21 = vld [vmem:[#allocation2 + $0x90] sm:$0xff]  ;;  %v83_v23 = vld [vmem:[#allocation2 + $0xa8] sm:$0xff] }
  0x65   :  { %519 = vmatprep.mubr.f32.mxu1 %v1729_v0  ;;  %1466 = vmatpush1.bf16.msra.mxu1 %v1465_v54  ;;  %v73_v54 = vld [vmem:[#allocation2 + $0x58] sm:$0xff]  ;;  %v1540_v56 = vpack.c.bf16 %v877_v53, %v876_v52  ;;  %v84_v24 = vld [vmem:[#allocation2 + $0xb0] sm:$0xff]  ;;  %v86_v29 = vld [vmem:[#allocation2 + $0xc0] sm:$0xff] }
  0x66   :  { %1514 = vmatpush1.bf16.msra.mxu0 %v1513_v55  ;;  %1467 = vmatprep.subr.bf16.mxu1 %v1730_v40  ;;  %v1492_v55 = vpack.c.bf16 %v845_v51, %v844_v50  ;;  %v77_v17 = vld [vmem:[#allocation2 + $0x78] sm:$0xff]  ;;  %v87_v30 = vld [vmem:[#allocation2 + $0xc8] sm:$0xff]  ;;  %v88_v31 = vld [vmem:[#allocation2 + $0xd0] sm:$0xff] }
  0x67   :  { %263 = vmatmul.mubr.f32.gmra.mrb[6].mxu0 %v65_v60  ;;  %1515 = vmatprep.subr.bf16.mxu0 %v1730_v40  ;;  %v85_v28 = vld [vmem:[#allocation2 + $0xb8] sm:$0xff]  ;;  %v92_v35 = vld [vmem:[#allocation2 + $0xf0] sm:$0xff] }
  0x68   :  { %520 = vmatmul.mubr.f32.gmra.mrb[6].mxu1 %v65_v60  ;;  %268 = vmatprep.mubr.f32.mxu0 %v1729_v0  ;;  %v879_v60 = vld [vmem:[#allocation7 + $0x1c8] sm:$0xff]  ;;  %v93_v36 = vld [vmem:[#allocation2 + $0xf8] sm:$0xff] }
  0x69   :  { %525 = vmatprep.mubr.f32.mxu1 %v1729_v0  ;;  %1469 = vmatpush1.bf16.msra.mxu1 %v1468_v61  ;;  %v74_v61 = vld [vmem:[#allocation2 + $0x60] sm:$0xff]  ;;  %v1543_v63 = vpack.c.bf16 %v879_v60, %v878_v59 }
  0x6a   :  { %1517 = vmatpush1.bf16.msra.mxu0 %v1516_v62  ;;  %1470 = vmatprep.subr.bf16.mxu1 %v1730_v40  ;;  %v1495_v62 = vpack.c.bf16 %v847_v58, %v846_v57 }
  0x6b   :  { %269 = vmatmul.mubr.f32.gmra.mrb[8].mxu0 %v66_v4  ;;  %1518 = vmatprep.subr.bf16.mxu0 %v1730_v40 }
  0x6c   :  { %526 = vmatmul.mubr.f32.gmra.mrb[8].mxu1 %v66_v4  ;;  %274 = vmatprep.mubr.f32.mxu0 %v1729_v0  ;;  %v881_v4 = vld [vmem:[#allocation7 + $0x1d8] sm:$0xff] }
  0x6d   :  { %531 = vmatprep.mubr.f32.mxu1 %v1729_v0  ;;  %1472 = vmatpush1.bf16.msra.mxu1 %v1471_v5  ;;  %v75_v5 = vld [vmem:[#allocation2 + $0x68] sm:$0xff]  ;;  %v1546_v7 = vpack.c.bf16 %v881_v4, %v880_v3 }
  0x6e   :  { %1520 = vmatpush1.bf16.msra.mxu0 %v1519_v6  ;;  %1473 = vmatprep.subr.bf16.mxu1 %v1730_v40  ;;  %v1498_v6 = vpack.c.bf16 %v849_v2, %v848_v1 }
  0x6f   :  { %275 = vmatmul.mubr.f32.gmra.mrb[10].mxu0 %v67_v11  ;;  %1521 = vmatprep.subr.bf16.mxu0 %v1730_v40 }
  0x70   :  { %532 = vmatmul.mubr.f32.gmra.mrb[10].mxu1 %v67_v11  ;;  %280 = vmatprep.mubr.f32.mxu0 %v1729_v0  ;;  %v883_v11 = vld [vmem:[#allocation7 + $0x1e8] sm:$0xff] }
  0x71   :  { %537 = vmatprep.mubr.f32.mxu1 %v1729_v0  ;;  %1475 = vmatpush1.bf16.msra.mxu1 %v1474_v12  ;;  %v76_v12 = vld [vmem:[#allocation2 + $0x70] sm:$0xff]  ;;  %v1549_v14 = vpack.c.bf16 %v883_v11, %v882_v10 }
  0x72   :  { %1523 = vmatpush1.bf16.msra.mxu0 %v1522_v13  ;;  %1476 = vmatprep.subr.bf16.mxu1 %v1730_v40  ;;  %v1501_v13 = vpack.c.bf16 %v851_v9, %v850_v8 }
  0x73   :  { %281 = vmatmul.mubr.f32.gmra.mrb[12].mxu0 %v68_v18  ;;  %1524 = vmatprep.subr.bf16.mxu0 %v1730_v40 }
  0x74   :  { %538 = vmatmul.mubr.f32.gmra.mrb[12].mxu1 %v68_v18  ;;  %286 = vmatprep.mubr.f32.mxu0 %v1729_v0  ;;  %v1504_v18 = vpack.c.bf16 %v853_v16, %v852_v15 }
  0x75   :  { %543 = vmatprep.mubr.f32.mxu1 %v1729_v0  ;;  %1478 = vmatpush1.bf16.msra.mxu1 %v1477_v19  ;;  %v78_v19 = vld [vmem:[#allocation2 + $0x80] sm:$0xff] }
  0x76   :  { %1526 = vmatpush1.bf16.msra.mxu0 %v1525_v20  ;;  %1479 = vmatprep.subr.bf16.mxu1 %v1730_v40  ;;  %v79_v20 = vld [vmem:[#allocation2 + $0x88] sm:$0xff] }
  0x77   :  { %287 = vmatmul.mubr.f32.gmra.mrb[14].mxu0 %v69_v25  ;;  %1527 = vmatprep.subr.bf16.mxu0 %v1730_v40 }
  0x78   :  { %544 = vmatmul.mubr.f32.gmra.mrb[14].mxu1 %v69_v25  ;;  %292 = vmatprep.mubr.f32.mxu0 %v1729_v0  ;;  %v884_v25 = vld [vmem:[#allocation7 + $0x1f0] sm:$0xff] }
  0x79   :  { %549 = vmatprep.mubr.f32.mxu1 %v1729_v0  ;;  %1481 = vmatpush1.bf16.msra.mxu1 %v1480_v26  ;;  %v885_v26 = vld [vmem:[#allocation7 + $0x1f8] sm:$0xff] }
  0x7a   :  { %1529 = vmatpush1.bf16.msra.mxu0 %v1528_v27  ;;  %1482 = vmatprep.subr.bf16.mxu1 %v1730_v40  ;;  %v1552_v27 = vpack.c.bf16 %v885_v26, %v884_v25 }
  0x7b   :  { %293 = vmatmul.mubr.f32.gmra.mrb[16].mxu0 %v70_v32  ;;  %1530 = vmatprep.subr.bf16.mxu0 %v1730_v40 }
  0x7c   :  { %550 = vmatmul.mubr.f32.gmra.mrb[16].mxu1 %v70_v32  ;;  %298 = vmatprep.mubr.f32.mxu0 %v1729_v0  ;;  %v89_v32 = vld [vmem:[#allocation2 + $0xd8] sm:$0xff] }
  0x7d   :  { %555 = vmatprep.mubr.f32.mxu1 %v1729_v0  ;;  %1484 = vmatpush1.bf16.msra.mxu1 %v1483_v33  ;;  %v90_v33 = vld [vmem:[#allocation2 + $0xe0] sm:$0xff] }
  0x7e   :  { %1532 = vmatpush1.bf16.msra.mxu0 %v1531_v34  ;;  %1485 = vmatprep.subr.bf16.mxu1 %v1730_v40  ;;  %v91_v34 = vld [vmem:[#allocation2 + $0xe8] sm:$0xff] }
  0x7f   :  { %299 = vmatmul.mubr.f32.gmra.mrb[18].mxu0 %v71_v39  ;;  %1533 = vmatprep.subr.bf16.mxu0 %v1730_v40 }
  0x80   :  { %556 = vmatmul.mubr.f32.gmra.mrb[18].mxu1 %v71_v39  ;;  %304 = vmatprep.mubr.f32.mxu0 %v1729_v0  ;;  %v162_v39 = vsub.s32 0, %v161_v38 }
  0x81   :  { %561 = vmatprep.mubr.f32.mxu1 %v1729_v0  ;;  %1487 = vmatpush1.bf16.msra.mxu1 %v1486_v41  ;;  %v158_v41 = vld [vmem:[%s2093_s2] sm:$0xf] }
  0x82   :  { %1535 = vmatpush1.bf16.msra.mxu0 %v1534_v42  ;;  %1488 = vmatprep.subr.bf16.mxu1 %v1730_v40  ;;  %v170_v42 = vsub.s32 2, %v161_v38  ;;  %v1903_v45 = vrot.slane %v158_v41, %v162_v39 }
  0x83   :  { %305 = vmatmul.mubr.f32.gmra.mrb[20].mxu0 %v72_v47  ;;  %1536 = vmatprep.subr.bf16.mxu0 %v1730_v40 }
  0x84   :  { %562 = vmatmul.mubr.f32.gmra.mrb[20].mxu1 %v72_v47  ;;  %310 = vmatprep.mubr.f32.mxu0 %v1729_v0  ;;  %v1905_v46 = vrot.slane %v158_v41, %v170_v42  ;;  %v1907_v47 = vrot.slane %v158_v41, %v166_v43 }
  0x85   :  { %567 = vmatprep.mubr.f32.mxu1 %v1729_v0  ;;  %1490 = vmatpush1.bf16.msra.mxu1 %v1489_v48  ;;  %v1909_v48 = vrot.slane %v158_v41, %v174_v44 }
  0x86   :  { %1538 = vmatpush1.bf16.msra.mxu0 %v1537_v49  ;;  %1491 = vmatprep.subr.bf16.mxu1 %v1730_v40 }
  0x87   :  { %311 = vmatmul.mubr.f32.gmra.mrb[22].mxu0 %v73_v54  ;;  %1539 = vmatprep.subr.bf16.mxu0 %v1730_v40 }
  0x88   :  { %568 = vmatmul.mubr.f32.gmra.mrb[22].mxu1 %v73_v54  ;;  %316 = vmatprep.mubr.f32.mxu0 %v1729_v0 }
  0x89   :  { %573 = vmatprep.mubr.f32.mxu1 %v1729_v0  ;;  %1493 = vmatpush1.bf16.msra.mxu1 %v1492_v55 }
  0x8a   :  { %1541 = vmatpush1.bf16.msra.mxu0 %v1540_v56  ;;  %1494 = vmatprep.subr.bf16.mxu1 %v1730_v40 }
  0x8b   :  { %317 = vmatmul.mubr.f32.gmra.mrb[24].mxu0 %v74_v61  ;;  %1542 = vmatprep.subr.bf16.mxu0 %v1730_v40 }
  0x8c   :  { %574 = vmatmul.mubr.f32.gmra.mrb[24].mxu1 %v74_v61  ;;  %322 = vmatprep.mubr.f32.mxu0 %v1729_v0 }
  0x8d   :  { %579 = vmatprep.mubr.f32.mxu1 %v1729_v0  ;;  %1496 = vmatpush1.bf16.msra.mxu1 %v1495_v62 }
  0x8e   :  { %1544 = vmatpush1.bf16.msra.mxu0 %v1543_v63  ;;  %1497 = vmatprep.subr.bf16.mxu1 %v1730_v40 }
  0x8f   :  { %323 = vmatmul.mubr.f32.gmra.mrb[26].mxu0 %v75_v5  ;;  %1545 = vmatprep.subr.bf16.mxu0 %v1730_v40 }
  0x90   :  { %580 = vmatmul.mubr.f32.gmra.mrb[26].mxu1 %v75_v5  ;;  %328 = vmatprep.mubr.f32.mxu0 %v1729_v0 }
  0x91   :  { %585 = vmatprep.mubr.f32.mxu1 %v1729_v0  ;;  %1499 = vmatpush1.bf16.msra.mxu1 %v1498_v6 }
  0x92   :  { %1547 = vmatpush1.bf16.msra.mxu0 %v1546_v7  ;;  %1500 = vmatprep.subr.bf16.mxu1 %v1730_v40 }
  0x93   :  { %329 = vmatmul.mubr.f32.gmra.mrb[28].mxu0 %v76_v12  ;;  %1548 = vmatprep.subr.bf16.mxu0 %v1730_v40 }
  0x94   :  { %586 = vmatmul.mubr.f32.gmra.mrb[28].mxu1 %v76_v12  ;;  %334 = vmatprep.mubr.f32.mxu0 %v1729_v0 }
  0x95   :  { %591 = vmatprep.mubr.f32.mxu1 %v1729_v0  ;;  %1502 = vmatpush1.bf16.msra.mxu1 %v1501_v13 }
  0x96   :  { %1550 = vmatpush1.bf16.msra.mxu0 %v1549_v14  ;;  %1503 = vmatprep.subr.bf16.mxu1 %v1730_v40 }
  0x97   :  { %335 = vmatmul.mubr.f32.gmra.mrb[30].mxu0 %v77_v17  ;;  %1551 = vmatprep.subr.bf16.mxu0 %v1730_v40  ;;  %v81_v40 = vld [vmem:[#allocation2 + $0x98] sm:$0xff] }
  0x98   :  { %592 = vmatmul.mubr.f32.gmra.mrb[30].mxu1 %v77_v17  ;;  %340 = vmatprep.mubr.f32.mxu0 %v1729_v0 }
  0x99   :  { %597 = vmatprep.mubr.f32.mxu1 %v1729_v0  ;;  %1505 = vmatpush1.bf16.msra.mxu1 %v1504_v18 }
  0x9a   :  { %1553 = vmatpush1.bf16.msra.mxu0 %v1552_v27 }
  0x9b   :  { %341 = vmatmul.mubr.f32.gmra.mrb[32].mxu0 %v78_v19 }
  0x9c   :  { %598 = vmatmul.mubr.f32.gmra.mrb[32].mxu1 %v78_v19  ;;  %346 = vmatprep.mubr.f32.mxu0 %v1729_v0 }
  0x9d   :  { %603 = vmatprep.mubr.f32.mxu1 %v1729_v0 }
  0x9f   :  { %347 = vmatmul.mubr.f32.gmra.mrb[34].mxu0 %v79_v20 }
  0xa0   :  { %604 = vmatmul.mubr.f32.gmra.mrb[34].mxu1 %v79_v20  ;;  %352 = vmatprep.mubr.f32.mxu0 %v1729_v0 }
  0xa1   :  { %609 = vmatprep.mubr.f32.mxu1 %v1729_v0 }
  0xa3   :  { %353 = vmatmul.mubr.f32.gmra.mrb[36].mxu0 %v80_v21 }
  0xa4   :  { %610 = vmatmul.mubr.f32.gmra.mrb[36].mxu1 %v80_v21  ;;  %358 = vmatprep.mubr.f32.mxu0 %v1729_v0 }
  0xa5   :  { %615 = vmatprep.mubr.f32.mxu1 %v1729_v0 }
  0xa7   :  { %359 = vmatmul.mubr.f32.gmra.mrb[38].mxu0 %v81_v40 }
  0xa8   :  { %616 = vmatmul.mubr.f32.gmra.mrb[38].mxu1 %v81_v40  ;;  %364 = vmatprep.mubr.f32.mxu0 %v1729_v0 }
  0xa9   :  { %621 = vmatprep.mubr.f32.mxu1 %v1729_v0 }
  0xab   :  { %365 = vmatmul.mubr.f32.gmra.mrb[40].mxu0 %v82_v22 }
  0xac   :  { %622 = vmatmul.mubr.f32.gmra.mrb[40].mxu1 %v82_v22  ;;  %370 = vmatprep.mubr.f32.mxu0 %v1729_v0 }
  0xad   :  { %627 = vmatprep.mubr.f32.mxu1 %v1729_v0 }
  0xaf   :  { %371 = vmatmul.mubr.f32.gmra.mrb[42].mxu0 %v83_v23 }
  0xb0   :  { %628 = vmatmul.mubr.f32.gmra.mrb[42].mxu1 %v83_v23  ;;  %376 = vmatprep.mubr.f32.mxu0 %v1729_v0 }
  0xb1   :  { %633 = vmatprep.mubr.f32.mxu1 %v1729_v0 }
  0xb3   :  { %377 = vmatmul.mubr.f32.gmra.mrb[44].mxu0 %v84_v24 }
  0xb4   :  { %634 = vmatmul.mubr.f32.gmra.mrb[44].mxu1 %v84_v24  ;;  %382 = vmatprep.mubr.f32.mxu0 %v1729_v0 }
  0xb5   :  { %639 = vmatprep.mubr.f32.mxu1 %v1729_v0 }
  0xb7   :  { %383 = vmatmul.mubr.f32.gmra.mrb[46].mxu0 %v85_v28 }
  0xb8   :  { %640 = vmatmul.mubr.f32.gmra.mrb[46].mxu1 %v85_v28  ;;  %388 = vmatprep.mubr.f32.mxu0 %v1729_v0 }
  0xb9   :  { %645 = vmatprep.mubr.f32.mxu1 %v1729_v0 }
  0xbb   :  { %389 = vmatmul.mubr.f32.gmra.mrb[48].mxu0 %v86_v29 }
  0xbc   :  { %646 = vmatmul.mubr.f32.gmra.mrb[48].mxu1 %v86_v29  ;;  %394 = vmatprep.mubr.f32.mxu0 %v1729_v0 }
  0xbd   :  { %651 = vmatprep.mubr.f32.mxu1 %v1729_v0 }
  0xbf   :  { %395 = vmatmul.mubr.f32.gmra.mrb[50].mxu0 %v87_v30 }
  0xc0   :  { %652 = vmatmul.mubr.f32.gmra.mrb[50].mxu1 %v87_v30  ;;  %400 = vmatprep.mubr.f32.mxu0 %v1729_v0 }
  0xc1   :  { %657 = vmatprep.mubr.f32.mxu1 %v1729_v0 }
  0xc3   :  { %401 = vmatmul.mubr.f32.gmra.mrb[52].mxu0 %v88_v31 }
  0xc4   :  { %658 = vmatmul.mubr.f32.gmra.mrb[52].mxu1 %v88_v31  ;;  %406 = vmatprep.mubr.f32.mxu0 %v1729_v0 }
  0xc5   :  { %663 = vmatprep.mubr.f32.mxu1 %v1729_v0 }
  0xc7   :  { %407 = vmatmul.mubr.f32.gmra.mrb[54].mxu0 %v89_v32 }
  0xc8   :  { %664 = vmatmul.mubr.f32.gmra.mrb[54].mxu1 %v89_v32  ;;  %412 = vmatprep.mubr.f32.mxu0 %v1729_v0 }
  0xc9   :  { %669 = vmatprep.mubr.f32.mxu1 %v1729_v0 }
  0xcb   :  { %413 = vmatmul.mubr.f32.gmra.mrb[56].mxu0 %v90_v33 }
  0xcc   :  { %670 = vmatmul.mubr.f32.gmra.mrb[56].mxu1 %v90_v33  ;;  %418 = vmatprep.mubr.f32.mxu0 %v1729_v0 }
  0xcd   :  { %675 = vmatprep.mubr.f32.mxu1 %v1729_v0 }
  0xcf   :  { %419 = vmatmul.mubr.f32.gmra.mrb[58].mxu0 %v91_v34 }
  0xd0   :  { %676 = vmatmul.mubr.f32.gmra.mrb[58].mxu1 %v91_v34  ;;  %424 = vmatprep.mubr.f32.mxu0 %v1729_v0 }
  0xd1   :  { %681 = vmatprep.mubr.f32.mxu1 %v1729_v0 }
  0xd3   :  { %425 = vmatmul.mubr.f32.gmra.mrb[60].mxu0 %v92_v35 }
  0xd4   :  { %682 = vmatmul.mubr.f32.gmra.mrb[60].mxu1 %v92_v35  ;;  %430 = vmatprep.mubr.f32.mxu0 %v1729_v0 }
  0xd5   :  { %687 = vmatprep.mubr.f32.mxu1 %v1729_v0 }
  0xd7   :  { %431 = vmatmul.mubr.f32.gmra.mrb[62].mxu0 %v93_v36 }
  0xd8   :  { %688 = vmatmul.mubr.f32.gmra.mrb[62].mxu1 %v93_v36 }
 0x12e   :  { %v246_v0 = vpop.f32.mrb[0].mxu0 }
 0x12f   :  { %v247_v49 = vadd.f32 %v246_v0, %v1903_v45  ;;  %v503_v50 = vpop.f32.mrb[0].mxu1  ;;  %v248_v51 = vpop.f32.mrb[1].mxu0 }
 0x130   :  { %v504_v52 = vadd.f32 %v503_v50, %v1905_v46  ;;  %v249_v53 = vadd.f32 %v248_v51, %v1907_v47  ;;  %v505_v54 = vpop.f32.mrb[1].mxu1 }
 0x131   :  { %v506_v55 = vadd.f32 %v505_v54, %v1909_v48  ;;  %v694_v59 = vmax.f32 %v247_v49, 0.0 }
 0x132   :  { %v696_v56 = vmax.f32 %v504_v52, 0.0  ;;  %v695_v57 = vmax.f32 %v249_v53, 0.0  ;;  %v252_v58 = vpop.f32.mrb[2].mxu0 }
 0x133   :  { %v697_v60 = vmax.f32 %v506_v55, 0.0  ;;  %v253_v61 = vadd.f32 %v252_v58, %v1903_v45  ;;  %v509_v62 = vpop.f32.mrb[2].mxu1  ;;  %v254_v63 = vpop.f32.mrb[3].mxu0 }
 0x134   :  { %v510_v1 = vadd.f32 %v509_v62, %v1905_v46  ;;  %v255_v2 = vadd.f32 %v254_v63, %v1907_v47  ;;  %v511_v3 = vpop.f32.mrb[3].mxu1  ;;  %957 = vmatprep.mubr.f32.mxu1 %v695_v57 }
 0x135   :  { %v512_v4 = vadd.f32 %v511_v3, %v1909_v48  ;;  %1182 = vmatprep.mubr.f32.mxu0 %v697_v60  ;;  %958 = vmatmul.mubr.f32.vlgmr.msra.gmra.mrb[64].mxu1 %v694_v59  ;;  %v698_v8 = vmax.f32 %v253_v61, 0.0 }
 0x136   :  { %v700_v5 = vmax.f32 %v510_v1, 0.0  ;;  %v699_v6 = vmax.f32 %v255_v2, 0.0  ;;  %1183 = vmatmul.mubr.f32.vlgmr.msra.gmra.mrb[64].mxu0 %v696_v56  ;;  %v258_v7 = vpop.f32.mrb[4].mxu0 }
 0x137   :  { %v701_v9 = vmax.f32 %v512_v4, 0.0  ;;  %v259_v10 = vadd.f32 %v258_v7, %v1903_v45  ;;  %v515_v11 = vpop.f32.mrb[4].mxu1  ;;  %v260_v12 = vpop.f32.mrb[5].mxu0 }
 0x138   :  { %v516_v13 = vadd.f32 %v515_v11, %v1905_v46  ;;  %v261_v14 = vadd.f32 %v260_v12, %v1907_v47  ;;  %v517_v15 = vpop.f32.mrb[5].mxu1  ;;  %962 = vmatprep.mubr.f32.mxu1 %v699_v6 }
 0x139   :  { %v518_v16 = vadd.f32 %v517_v15, %v1909_v48  ;;  %1187 = vmatprep.mubr.f32.mxu0 %v701_v9  ;;  %963 = vmatmul.mubr.f32.gmra.mrb[66].mxu1 %v698_v8  ;;  %v702_v20 = vmax.f32 %v259_v10, 0.0 }
 0x13a   :  { %v704_v17 = vmax.f32 %v516_v13, 0.0  ;;  %v703_v18 = vmax.f32 %v261_v14, 0.0  ;;  %1188 = vmatmul.mubr.f32.gmra.mrb[66].mxu0 %v700_v5  ;;  %v264_v19 = vpop.f32.mrb[6].mxu0 }
 0x13b   :  { %v705_v21 = vmax.f32 %v518_v16, 0.0  ;;  %v265_v40 = vadd.f32 %v264_v19, %v1903_v45  ;;  %v521_v22 = vpop.f32.mrb[6].mxu1  ;;  %v266_v23 = vpop.f32.mrb[7].mxu0 }
 0x13c   :  { %v522_v24 = vadd.f32 %v521_v22, %v1905_v46  ;;  %v267_v25 = vadd.f32 %v266_v23, %v1907_v47  ;;  %v523_v26 = vpop.f32.mrb[7].mxu1  ;;  %967 = vmatprep.mubr.f32.mxu1 %v703_v18 }
 0x13d   :  { %v524_v27 = vadd.f32 %v523_v26, %v1909_v48  ;;  %1192 = vmatprep.mubr.f32.mxu0 %v705_v21  ;;  %968 = vmatmul.mubr.f32.gmra.mrb[68].mxu1 %v702_v20  ;;  %v706_v31 = vmax.f32 %v265_v40, 0.0 }
 0x13e   :  { %v708_v28 = vmax.f32 %v522_v24, 0.0  ;;  %v707_v29 = vmax.f32 %v267_v25, 0.0  ;;  %1193 = vmatmul.mubr.f32.gmra.mrb[68].mxu0 %v704_v17  ;;  %v270_v30 = vpop.f32.mrb[8].mxu0 }
 0x13f   :  { %v709_v32 = vmax.f32 %v524_v27, 0.0  ;;  %v271_v33 = vadd.f32 %v270_v30, %v1903_v45  ;;  %v527_v34 = vpop.f32.mrb[8].mxu1  ;;  %v272_v35 = vpop.f32.mrb[9].mxu0 }
 0x140   :  { %v528_v36 = vadd.f32 %v527_v34, %v1905_v46  ;;  %v273_v37 = vadd.f32 %v272_v35, %v1907_v47  ;;  %v529_v38 = vpop.f32.mrb[9].mxu1  ;;  %972 = vmatprep.mubr.f32.mxu1 %v707_v29 }
 0x141   :  { %v530_v39 = vadd.f32 %v529_v38, %v1909_v48  ;;  %1197 = vmatprep.mubr.f32.mxu0 %v709_v32  ;;  %973 = vmatmul.mubr.f32.gmra.mrb[70].mxu1 %v706_v31  ;;  %v710_v44 = vmax.f32 %v271_v33, 0.0 }
 0x142   :  { %v712_v41 = vmax.f32 %v528_v36, 0.0  ;;  %v711_v42 = vmax.f32 %v273_v37, 0.0  ;;  %1198 = vmatmul.mubr.f32.gmra.mrb[70].mxu0 %v708_v28  ;;  %v276_v43 = vpop.f32.mrb[10].mxu0 }
 0x143   :  { %v713_v0 = vmax.f32 %v530_v39, 0.0  ;;  %v277_v49 = vadd.f32 %v276_v43, %v1903_v45  ;;  %v533_v50 = vpop.f32.mrb[10].mxu1  ;;  %v278_v51 = vpop.f32.mrb[11].mxu0 }
 0x144   :  { %v534_v52 = vadd.f32 %v533_v50, %v1905_v46  ;;  %v279_v53 = vadd.f32 %v278_v51, %v1907_v47  ;;  %v535_v54 = vpop.f32.mrb[11].mxu1  ;;  %977 = vmatprep.mubr.f32.mxu1 %v711_v42 }
 0x145   :  { %v536_v55 = vadd.f32 %v535_v54, %v1909_v48  ;;  %1202 = vmatprep.mubr.f32.mxu0 %v713_v0  ;;  %978 = vmatmul.mubr.f32.gmra.mrb[72].mxu1 %v710_v44  ;;  %v714_v59 = vmax.f32 %v277_v49, 0.0 }
 0x146   :  { %v716_v56 = vmax.f32 %v534_v52, 0.0  ;;  %v715_v57 = vmax.f32 %v279_v53, 0.0  ;;  %1203 = vmatmul.mubr.f32.gmra.mrb[72].mxu0 %v712_v41  ;;  %v282_v58 = vpop.f32.mrb[12].mxu0 }
 0x147   :  { %v717_v60 = vmax.f32 %v536_v55, 0.0  ;;  %v283_v61 = vadd.f32 %v282_v58, %v1903_v45  ;;  %v539_v62 = vpop.f32.mrb[12].mxu1  ;;  %v284_v63 = vpop.f32.mrb[13].mxu0 }
 0x148   :  { %v540_v1 = vadd.f32 %v539_v62, %v1905_v46  ;;  %v285_v2 = vadd.f32 %v284_v63, %v1907_v47  ;;  %v541_v3 = vpop.f32.mrb[13].mxu1  ;;  %982 = vmatprep.mubr.f32.mxu1 %v715_v57 }
 0x149   :  { %v542_v4 = vadd.f32 %v541_v3, %v1909_v48  ;;  %1207 = vmatprep.mubr.f32.mxu0 %v717_v60  ;;  %983 = vmatmul.mubr.f32.gmra.mrb[74].mxu1 %v714_v59  ;;  %v718_v8 = vmax.f32 %v283_v61, 0.0 }
 0x14a   :  { %v720_v5 = vmax.f32 %v540_v1, 0.0  ;;  %v719_v6 = vmax.f32 %v285_v2, 0.0  ;;  %1208 = vmatmul.mubr.f32.gmra.mrb[74].mxu0 %v716_v56  ;;  %v288_v7 = vpop.f32.mrb[14].mxu0 }
 0x14b   :  { %v721_v9 = vmax.f32 %v542_v4, 0.0  ;;  %v289_v10 = vadd.f32 %v288_v7, %v1903_v45  ;;  %v545_v11 = vpop.f32.mrb[14].mxu1  ;;  %v290_v12 = vpop.f32.mrb[15].mxu0 }
 0x14c   :  { %v546_v13 = vadd.f32 %v545_v11, %v1905_v46  ;;  %v291_v14 = vadd.f32 %v290_v12, %v1907_v47  ;;  %v547_v15 = vpop.f32.mrb[15].mxu1  ;;  %987 = vmatprep.mubr.f32.mxu1 %v719_v6 }
 0x14d   :  { %v548_v16 = vadd.f32 %v547_v15, %v1909_v48  ;;  %1212 = vmatprep.mubr.f32.mxu0 %v721_v9  ;;  %988 = vmatmul.mubr.f32.gmra.mrb[76].mxu1 %v718_v8  ;;  %v722_v20 = vmax.f32 %v289_v10, 0.0 }
 0x14e   :  { %v724_v17 = vmax.f32 %v546_v13, 0.0  ;;  %v723_v18 = vmax.f32 %v291_v14, 0.0  ;;  %1213 = vmatmul.mubr.f32.gmra.mrb[76].mxu0 %v720_v5  ;;  %v294_v19 = vpop.f32.mrb[16].mxu0 }
 0x14f   :  { %v725_v21 = vmax.f32 %v548_v16, 0.0  ;;  %v295_v40 = vadd.f32 %v294_v19, %v1903_v45  ;;  %v551_v22 = vpop.f32.mrb[16].mxu1  ;;  %v296_v23 = vpop.f32.mrb[17].mxu0 }
 0x150   :  { %v552_v24 = vadd.f32 %v551_v22, %v1905_v46  ;;  %v297_v25 = vadd.f32 %v296_v23, %v1907_v47  ;;  %v553_v26 = vpop.f32.mrb[17].mxu1  ;;  %992 = vmatprep.mubr.f32.mxu1 %v723_v18 }
 0x151   :  { %v554_v27 = vadd.f32 %v553_v26, %v1909_v48  ;;  %1217 = vmatprep.mubr.f32.mxu0 %v725_v21  ;;  %993 = vmatmul.mubr.f32.gmra.mrb[78].mxu1 %v722_v20  ;;  %v726_v31 = vmax.f32 %v295_v40, 0.0 }
 0x152   :  { %v728_v28 = vmax.f32 %v552_v24, 0.0  ;;  %v727_v29 = vmax.f32 %v297_v25, 0.0  ;;  %1218 = vmatmul.mubr.f32.gmra.mrb[78].mxu0 %v724_v17  ;;  %v300_v30 = vpop.f32.mrb[18].mxu0 }
 0x153   :  { %v729_v32 = vmax.f32 %v554_v27, 0.0  ;;  %v301_v33 = vadd.f32 %v300_v30, %v1903_v45  ;;  %v557_v34 = vpop.f32.mrb[18].mxu1  ;;  %v302_v35 = vpop.f32.mrb[19].mxu0 }
 0x154   :  { %v558_v36 = vadd.f32 %v557_v34, %v1905_v46  ;;  %v303_v37 = vadd.f32 %v302_v35, %v1907_v47  ;;  %v559_v38 = vpop.f32.mrb[19].mxu1  ;;  %997 = vmatprep.mubr.f32.mxu1 %v727_v29 }
 0x155   :  { %v560_v39 = vadd.f32 %v559_v38, %v1909_v48  ;;  %1222 = vmatprep.mubr.f32.mxu0 %v729_v32  ;;  %998 = vmatmul.mubr.f32.gmra.mrb[80].mxu1 %v726_v31  ;;  %v730_v44 = vmax.f32 %v301_v33, 0.0 }
 0x156   :  { %v732_v41 = vmax.f32 %v558_v36, 0.0  ;;  %v731_v42 = vmax.f32 %v303_v37, 0.0  ;;  %1223 = vmatmul.mubr.f32.gmra.mrb[80].mxu0 %v728_v28  ;;  %v306_v43 = vpop.f32.mrb[20].mxu0 }
 0x157   :  { %v733_v0 = vmax.f32 %v560_v39, 0.0  ;;  %v307_v49 = vadd.f32 %v306_v43, %v1903_v45  ;;  %v563_v50 = vpop.f32.mrb[20].mxu1  ;;  %v308_v51 = vpop.f32.mrb[21].mxu0 }
 0x158   :  { %v564_v52 = vadd.f32 %v563_v50, %v1905_v46  ;;  %v309_v53 = vadd.f32 %v308_v51, %v1907_v47  ;;  %v565_v54 = vpop.f32.mrb[21].mxu1  ;;  %1002 = vmatprep.mubr.f32.mxu1 %v731_v42 }
 0x159   :  { %v566_v55 = vadd.f32 %v565_v54, %v1909_v48  ;;  %1227 = vmatprep.mubr.f32.mxu0 %v733_v0  ;;  %1003 = vmatmul.mubr.f32.gmra.mrb[82].mxu1 %v730_v44  ;;  %v734_v59 = vmax.f32 %v307_v49, 0.0 }
 0x15a   :  { %v736_v56 = vmax.f32 %v564_v52, 0.0  ;;  %v735_v57 = vmax.f32 %v309_v53, 0.0  ;;  %1228 = vmatmul.mubr.f32.gmra.mrb[82].mxu0 %v732_v41  ;;  %v312_v58 = vpop.f32.mrb[22].mxu0 }
 0x15b   :  { %v737_v60 = vmax.f32 %v566_v55, 0.0  ;;  %v313_v61 = vadd.f32 %v312_v58, %v1903_v45  ;;  %v569_v62 = vpop.f32.mrb[22].mxu1  ;;  %v314_v63 = vpop.f32.mrb[23].mxu0 }
 0x15c   :  { %v570_v1 = vadd.f32 %v569_v62, %v1905_v46  ;;  %v315_v2 = vadd.f32 %v314_v63, %v1907_v47  ;;  %v571_v3 = vpop.f32.mrb[23].mxu1  ;;  %1007 = vmatprep.mubr.f32.mxu1 %v735_v57 }
 0x15d   :  { %v572_v4 = vadd.f32 %v571_v3, %v1909_v48  ;;  %1232 = vmatprep.mubr.f32.mxu0 %v737_v60  ;;  %1008 = vmatmul.mubr.f32.gmra.mrb[84].mxu1 %v734_v59  ;;  %v738_v8 = vmax.f32 %v313_v61, 0.0 }
 0x15e   :  { %v740_v5 = vmax.f32 %v570_v1, 0.0  ;;  %v739_v6 = vmax.f32 %v315_v2, 0.0  ;;  %1233 = vmatmul.mubr.f32.gmra.mrb[84].mxu0 %v736_v56  ;;  %v318_v7 = vpop.f32.mrb[24].mxu0 }
 0x15f   :  { %v741_v9 = vmax.f32 %v572_v4, 0.0  ;;  %v319_v10 = vadd.f32 %v318_v7, %v1903_v45  ;;  %v575_v11 = vpop.f32.mrb[24].mxu1  ;;  %v320_v12 = vpop.f32.mrb[25].mxu0 }
 0x160   :  { %v576_v13 = vadd.f32 %v575_v11, %v1905_v46  ;;  %v321_v14 = vadd.f32 %v320_v12, %v1907_v47  ;;  %v577_v15 = vpop.f32.mrb[25].mxu1  ;;  %1012 = vmatprep.mubr.f32.mxu1 %v739_v6 }
 0x161   :  { %v578_v16 = vadd.f32 %v577_v15, %v1909_v48  ;;  %1237 = vmatprep.mubr.f32.mxu0 %v741_v9  ;;  %1013 = vmatmul.mubr.f32.gmra.mrb[86].mxu1 %v738_v8  ;;  %v742_v20 = vmax.f32 %v319_v10, 0.0 }
 0x162   :  { %v744_v17 = vmax.f32 %v576_v13, 0.0  ;;  %v743_v18 = vmax.f32 %v321_v14, 0.0  ;;  %1238 = vmatmul.mubr.f32.gmra.mrb[86].mxu0 %v740_v5  ;;  %v324_v19 = vpop.f32.mrb[26].mxu0 }
 0x163   :  { %v745_v21 = vmax.f32 %v578_v16, 0.0  ;;  %v325_v40 = vadd.f32 %v324_v19, %v1903_v45  ;;  %v581_v22 = vpop.f32.mrb[26].mxu1  ;;  %v326_v23 = vpop.f32.mrb[27].mxu0 }
 0x164   :  { %v582_v24 = vadd.f32 %v581_v22, %v1905_v46  ;;  %v327_v25 = vadd.f32 %v326_v23, %v1907_v47  ;;  %v583_v26 = vpop.f32.mrb[27].mxu1  ;;  %1017 = vmatprep.mubr.f32.mxu1 %v743_v18 }
 0x165   :  { %v584_v27 = vadd.f32 %v583_v26, %v1909_v48  ;;  %1242 = vmatprep.mubr.f32.mxu0 %v745_v21  ;;  %1018 = vmatmul.mubr.f32.gmra.mrb[88].mxu1 %v742_v20  ;;  %v746_v31 = vmax.f32 %v325_v40, 0.0 }
 0x166   :  { %v748_v28 = vmax.f32 %v582_v24, 0.0  ;;  %v747_v29 = vmax.f32 %v327_v25, 0.0  ;;  %1243 = vmatmul.mubr.f32.gmra.mrb[88].mxu0 %v744_v17  ;;  %v330_v30 = vpop.f32.mrb[28].mxu0 }
 0x167   :  { %v749_v32 = vmax.f32 %v584_v27, 0.0  ;;  %v331_v33 = vadd.f32 %v330_v30, %v1903_v45  ;;  %v587_v34 = vpop.f32.mrb[28].mxu1  ;;  %v332_v35 = vpop.f32.mrb[29].mxu0 }
 0x168   :  { %v588_v36 = vadd.f32 %v587_v34, %v1905_v46  ;;  %v333_v37 = vadd.f32 %v332_v35, %v1907_v47  ;;  %v589_v38 = vpop.f32.mrb[29].mxu1  ;;  %1022 = vmatprep.mubr.f32.mxu1 %v747_v29 }
 0x169   :  { %v590_v39 = vadd.f32 %v589_v38, %v1909_v48  ;;  %1247 = vmatprep.mubr.f32.mxu0 %v749_v32  ;;  %1023 = vmatmul.mubr.f32.gmra.mrb[90].mxu1 %v746_v31  ;;  %v750_v44 = vmax.f32 %v331_v33, 0.0 }
 0x16a   :  { %v752_v41 = vmax.f32 %v588_v36, 0.0  ;;  %v751_v42 = vmax.f32 %v333_v37, 0.0  ;;  %1248 = vmatmul.mubr.f32.gmra.mrb[90].mxu0 %v748_v28  ;;  %v336_v43 = vpop.f32.mrb[30].mxu0 }
 0x16b   :  { %v753_v0 = vmax.f32 %v590_v39, 0.0  ;;  %v337_v49 = vadd.f32 %v336_v43, %v1903_v45  ;;  %v593_v50 = vpop.f32.mrb[30].mxu1  ;;  %v338_v51 = vpop.f32.mrb[31].mxu0 }
 0x16c   :  { %v594_v52 = vadd.f32 %v593_v50, %v1905_v46  ;;  %v339_v53 = vadd.f32 %v338_v51, %v1907_v47  ;;  %v595_v54 = vpop.f32.mrb[31].mxu1  ;;  %1027 = vmatprep.mubr.f32.mxu1 %v751_v42 }
 0x16d   :  { %v596_v55 = vadd.f32 %v595_v54, %v1909_v48  ;;  %1252 = vmatprep.mubr.f32.mxu0 %v753_v0  ;;  %1028 = vmatmul.mubr.f32.gmra.mrb[92].mxu1 %v750_v44  ;;  %v754_v59 = vmax.f32 %v337_v49, 0.0 }
 0x16e   :  { %v756_v56 = vmax.f32 %v594_v52, 0.0  ;;  %v755_v57 = vmax.f32 %v339_v53, 0.0  ;;  %1253 = vmatmul.mubr.f32.gmra.mrb[92].mxu0 %v752_v41  ;;  %v342_v58 = vpop.f32.mrb[32].mxu0 }
 0x16f   :  { %v757_v60 = vmax.f32 %v596_v55, 0.0  ;;  %v343_v61 = vadd.f32 %v342_v58, %v1903_v45  ;;  %v599_v62 = vpop.f32.mrb[32].mxu1  ;;  %v344_v63 = vpop.f32.mrb[33].mxu0 }
 0x170   :  { %v600_v1 = vadd.f32 %v599_v62, %v1905_v46  ;;  %v345_v2 = vadd.f32 %v344_v63, %v1907_v47  ;;  %v601_v3 = vpop.f32.mrb[33].mxu1  ;;  %1032 = vmatprep.mubr.f32.mxu1 %v755_v57 }
 0x171   :  { %v602_v4 = vadd.f32 %v601_v3, %v1909_v48  ;;  %1257 = vmatprep.mubr.f32.mxu0 %v757_v60  ;;  %1033 = vmatmul.mubr.f32.gmra.mrb[94].mxu1 %v754_v59  ;;  %v758_v8 = vmax.f32 %v343_v61, 0.0 }
 0x172   :  { %v760_v5 = vmax.f32 %v600_v1, 0.0  ;;  %v759_v6 = vmax.f32 %v345_v2, 0.0  ;;  %1258 = vmatmul.mubr.f32.gmra.mrb[94].mxu0 %v756_v56  ;;  %v348_v7 = vpop.f32.mrb[34].mxu0 }
 0x173   :  { %v761_v9 = vmax.f32 %v602_v4, 0.0  ;;  %v349_v10 = vadd.f32 %v348_v7, %v1903_v45  ;;  %v605_v11 = vpop.f32.mrb[34].mxu1  ;;  %v350_v12 = vpop.f32.mrb[35].mxu0 }
 0x174   :  { %v606_v13 = vadd.f32 %v605_v11, %v1905_v46  ;;  %v351_v14 = vadd.f32 %v350_v12, %v1907_v47  ;;  %v607_v15 = vpop.f32.mrb[35].mxu1  ;;  %1037 = vmatprep.mubr.f32.mxu1 %v759_v6 }
 0x175   :  { %v608_v16 = vadd.f32 %v607_v15, %v1909_v48  ;;  %1262 = vmatprep.mubr.f32.mxu0 %v761_v9  ;;  %1038 = vmatmul.mubr.f32.gmra.mrb[96].mxu1 %v758_v8  ;;  %v762_v20 = vmax.f32 %v349_v10, 0.0 }
 0x176   :  { %v764_v17 = vmax.f32 %v606_v13, 0.0  ;;  %v763_v18 = vmax.f32 %v351_v14, 0.0  ;;  %1263 = vmatmul.mubr.f32.gmra.mrb[96].mxu0 %v760_v5  ;;  %v354_v19 = vpop.f32.mrb[36].mxu0 }
 0x177   :  { %v765_v21 = vmax.f32 %v608_v16, 0.0  ;;  %v355_v40 = vadd.f32 %v354_v19, %v1903_v45  ;;  %v611_v22 = vpop.f32.mrb[36].mxu1  ;;  %v356_v23 = vpop.f32.mrb[37].mxu0 }
 0x178   :  { %v612_v24 = vadd.f32 %v611_v22, %v1905_v46  ;;  %v357_v25 = vadd.f32 %v356_v23, %v1907_v47  ;;  %v613_v26 = vpop.f32.mrb[37].mxu1  ;;  %1042 = vmatprep.mubr.f32.mxu1 %v763_v18 }
 0x179   :  { %v614_v27 = vadd.f32 %v613_v26, %v1909_v48  ;;  %1267 = vmatprep.mubr.f32.mxu0 %v765_v21  ;;  %1043 = vmatmul.mubr.f32.gmra.mrb[98].mxu1 %v762_v20  ;;  %v766_v31 = vmax.f32 %v355_v40, 0.0 }
 0x17a   :  { %v768_v28 = vmax.f32 %v612_v24, 0.0  ;;  %v767_v29 = vmax.f32 %v357_v25, 0.0  ;;  %1268 = vmatmul.mubr.f32.gmra.mrb[98].mxu0 %v764_v17  ;;  %v360_v30 = vpop.f32.mrb[38].mxu0 }
 0x17b   :  { %v769_v32 = vmax.f32 %v614_v27, 0.0  ;;  %v361_v33 = vadd.f32 %v360_v30, %v1903_v45  ;;  %v617_v34 = vpop.f32.mrb[38].mxu1  ;;  %v362_v35 = vpop.f32.mrb[39].mxu0 }
 0x17c   :  { %v618_v36 = vadd.f32 %v617_v34, %v1905_v46  ;;  %v363_v37 = vadd.f32 %v362_v35, %v1907_v47  ;;  %v619_v38 = vpop.f32.mrb[39].mxu1  ;;  %1047 = vmatprep.mubr.f32.mxu1 %v767_v29 }
 0x17d   :  { %v620_v39 = vadd.f32 %v619_v38, %v1909_v48  ;;  %1272 = vmatprep.mubr.f32.mxu0 %v769_v32  ;;  %1048 = vmatmul.mubr.f32.gmra.mrb[100].mxu1 %v766_v31  ;;  %v770_v44 = vmax.f32 %v361_v33, 0.0 }
 0x17e   :  { %v772_v41 = vmax.f32 %v618_v36, 0.0  ;;  %v771_v42 = vmax.f32 %v363_v37, 0.0  ;;  %1273 = vmatmul.mubr.f32.gmra.mrb[100].mxu0 %v768_v28  ;;  %v366_v43 = vpop.f32.mrb[40].mxu0 }
 0x17f   :  { %v773_v0 = vmax.f32 %v620_v39, 0.0  ;;  %v367_v49 = vadd.f32 %v366_v43, %v1903_v45  ;;  %v623_v50 = vpop.f32.mrb[40].mxu1  ;;  %v368_v51 = vpop.f32.mrb[41].mxu0 }
 0x180   :  { %v624_v52 = vadd.f32 %v623_v50, %v1905_v46  ;;  %v369_v53 = vadd.f32 %v368_v51, %v1907_v47  ;;  %v625_v54 = vpop.f32.mrb[41].mxu1  ;;  %1052 = vmatprep.mubr.f32.mxu1 %v771_v42 }
 0x181   :  { %v626_v55 = vadd.f32 %v625_v54, %v1909_v48  ;;  %1277 = vmatprep.mubr.f32.mxu0 %v773_v0  ;;  %1053 = vmatmul.mubr.f32.gmra.mrb[102].mxu1 %v770_v44  ;;  %v774_v59 = vmax.f32 %v367_v49, 0.0 }
 0x182   :  { %v776_v56 = vmax.f32 %v624_v52, 0.0  ;;  %v775_v57 = vmax.f32 %v369_v53, 0.0  ;;  %1278 = vmatmul.mubr.f32.gmra.mrb[102].mxu0 %v772_v41  ;;  %v372_v58 = vpop.f32.mrb[42].mxu0 }
 0x183   :  { %v777_v60 = vmax.f32 %v626_v55, 0.0  ;;  %v373_v61 = vadd.f32 %v372_v58, %v1903_v45  ;;  %v629_v62 = vpop.f32.mrb[42].mxu1  ;;  %v374_v63 = vpop.f32.mrb[43].mxu0 }
 0x184   :  { %v630_v1 = vadd.f32 %v629_v62, %v1905_v46  ;;  %v375_v2 = vadd.f32 %v374_v63, %v1907_v47  ;;  %v631_v3 = vpop.f32.mrb[43].mxu1  ;;  %1057 = vmatprep.mubr.f32.mxu1 %v775_v57 }
 0x185   :  { %v632_v4 = vadd.f32 %v631_v3, %v1909_v48  ;;  %1282 = vmatprep.mubr.f32.mxu0 %v777_v60  ;;  %1058 = vmatmul.mubr.f32.gmra.mrb[104].mxu1 %v774_v59  ;;  %v778_v8 = vmax.f32 %v373_v61, 0.0 }
 0x186   :  { %v780_v5 = vmax.f32 %v630_v1, 0.0  ;;  %v779_v6 = vmax.f32 %v375_v2, 0.0  ;;  %1283 = vmatmul.mubr.f32.gmra.mrb[104].mxu0 %v776_v56  ;;  %v378_v7 = vpop.f32.mrb[44].mxu0 }
 0x187   :  { %v781_v9 = vmax.f32 %v632_v4, 0.0  ;;  %v379_v10 = vadd.f32 %v378_v7, %v1903_v45  ;;  %v635_v11 = vpop.f32.mrb[44].mxu1  ;;  %v380_v12 = vpop.f32.mrb[45].mxu0 }
 0x188   :  { %v636_v13 = vadd.f32 %v635_v11, %v1905_v46  ;;  %v381_v14 = vadd.f32 %v380_v12, %v1907_v47  ;;  %v637_v15 = vpop.f32.mrb[45].mxu1  ;;  %1062 = vmatprep.mubr.f32.mxu1 %v779_v6 }
 0x189   :  { %v638_v16 = vadd.f32 %v637_v15, %v1909_v48  ;;  %1287 = vmatprep.mubr.f32.mxu0 %v781_v9  ;;  %1063 = vmatmul.mubr.f32.gmra.mrb[106].mxu1 %v778_v8  ;;  %v782_v20 = vmax.f32 %v379_v10, 0.0 }
 0x18a   :  { %v784_v17 = vmax.f32 %v636_v13, 0.0  ;;  %v783_v18 = vmax.f32 %v381_v14, 0.0  ;;  %1288 = vmatmul.mubr.f32.gmra.mrb[106].mxu0 %v780_v5  ;;  %v384_v19 = vpop.f32.mrb[46].mxu0 }
 0x18b   :  { %v785_v21 = vmax.f32 %v638_v16, 0.0  ;;  %v385_v40 = vadd.f32 %v384_v19, %v1903_v45  ;;  %v641_v22 = vpop.f32.mrb[46].mxu1  ;;  %v386_v23 = vpop.f32.mrb[47].mxu0 }
 0x18c   :  { %v642_v24 = vadd.f32 %v641_v22, %v1905_v46  ;;  %v387_v25 = vadd.f32 %v386_v23, %v1907_v47  ;;  %v643_v26 = vpop.f32.mrb[47].mxu1  ;;  %1067 = vmatprep.mubr.f32.mxu1 %v783_v18 }
 0x18d   :  { %v644_v27 = vadd.f32 %v643_v26, %v1909_v48  ;;  %1292 = vmatprep.mubr.f32.mxu0 %v785_v21  ;;  %1068 = vmatmul.mubr.f32.gmra.mrb[108].mxu1 %v782_v20  ;;  %v786_v31 = vmax.f32 %v385_v40, 0.0 }
 0x18e   :  { %v788_v28 = vmax.f32 %v642_v24, 0.0  ;;  %v787_v29 = vmax.f32 %v387_v25, 0.0  ;;  %1293 = vmatmul.mubr.f32.gmra.mrb[108].mxu0 %v784_v17  ;;  %v390_v30 = vpop.f32.mrb[48].mxu0 }
 0x18f   :  { %v789_v32 = vmax.f32 %v644_v27, 0.0  ;;  %v391_v33 = vadd.f32 %v390_v30, %v1903_v45  ;;  %v647_v34 = vpop.f32.mrb[48].mxu1  ;;  %v392_v35 = vpop.f32.mrb[49].mxu0 }
 0x190   :  { %v648_v36 = vadd.f32 %v647_v34, %v1905_v46  ;;  %v393_v37 = vadd.f32 %v392_v35, %v1907_v47  ;;  %v649_v38 = vpop.f32.mrb[49].mxu1  ;;  %1072 = vmatprep.mubr.f32.mxu1 %v787_v29 }
 0x191   :  { %v650_v39 = vadd.f32 %v649_v38, %v1909_v48  ;;  %1297 = vmatprep.mubr.f32.mxu0 %v789_v32  ;;  %1073 = vmatmul.mubr.f32.gmra.mrb[110].mxu1 %v786_v31  ;;  %v790_v44 = vmax.f32 %v391_v33, 0.0 }
 0x192   :  { %v792_v41 = vmax.f32 %v648_v36, 0.0  ;;  %v791_v42 = vmax.f32 %v393_v37, 0.0  ;;  %1298 = vmatmul.mubr.f32.gmra.mrb[110].mxu0 %v788_v28  ;;  %v396_v43 = vpop.f32.mrb[50].mxu0 }
 0x193   :  { %v793_v0 = vmax.f32 %v650_v39, 0.0  ;;  %v397_v49 = vadd.f32 %v396_v43, %v1903_v45  ;;  %v653_v50 = vpop.f32.mrb[50].mxu1  ;;  %v398_v51 = vpop.f32.mrb[51].mxu0 }
 0x194   :  { %v654_v52 = vadd.f32 %v653_v50, %v1905_v46  ;;  %v399_v53 = vadd.f32 %v398_v51, %v1907_v47  ;;  %v655_v54 = vpop.f32.mrb[51].mxu1  ;;  %1077 = vmatprep.mubr.f32.mxu1 %v791_v42 }
 0x195   :  { %v656_v55 = vadd.f32 %v655_v54, %v1909_v48  ;;  %1302 = vmatprep.mubr.f32.mxu0 %v793_v0  ;;  %1078 = vmatmul.mubr.f32.gmra.mrb[112].mxu1 %v790_v44  ;;  %v794_v59 = vmax.f32 %v397_v49, 0.0 }
 0x196   :  { %v796_v56 = vmax.f32 %v654_v52, 0.0  ;;  %v795_v57 = vmax.f32 %v399_v53, 0.0  ;;  %1303 = vmatmul.mubr.f32.gmra.mrb[112].mxu0 %v792_v41  ;;  %v402_v58 = vpop.f32.mrb[52].mxu0 }
 0x197   :  { %v797_v60 = vmax.f32 %v656_v55, 0.0  ;;  %v403_v61 = vadd.f32 %v402_v58, %v1903_v45  ;;  %v659_v62 = vpop.f32.mrb[52].mxu1  ;;  %v404_v63 = vpop.f32.mrb[53].mxu0 }
 0x198   :  { %v660_v1 = vadd.f32 %v659_v62, %v1905_v46  ;;  %v405_v2 = vadd.f32 %v404_v63, %v1907_v47  ;;  %v661_v3 = vpop.f32.mrb[53].mxu1  ;;  %1082 = vmatprep.mubr.f32.mxu1 %v795_v57 }
 0x199   :  { %v662_v4 = vadd.f32 %v661_v3, %v1909_v48  ;;  %1307 = vmatprep.mubr.f32.mxu0 %v797_v60  ;;  %1083 = vmatmul.mubr.f32.gmra.mrb[114].mxu1 %v794_v59  ;;  %v798_v8 = vmax.f32 %v403_v61, 0.0 }
 0x19a   :  { %v800_v5 = vmax.f32 %v660_v1, 0.0  ;;  %v799_v6 = vmax.f32 %v405_v2, 0.0  ;;  %1308 = vmatmul.mubr.f32.gmra.mrb[114].mxu0 %v796_v56  ;;  %v408_v7 = vpop.f32.mrb[54].mxu0 }
 0x19b   :  { %v801_v9 = vmax.f32 %v662_v4, 0.0  ;;  %v409_v10 = vadd.f32 %v408_v7, %v1903_v45  ;;  %v665_v11 = vpop.f32.mrb[54].mxu1  ;;  %v410_v12 = vpop.f32.mrb[55].mxu0 }
 0x19c   :  { %v666_v13 = vadd.f32 %v665_v11, %v1905_v46  ;;  %v411_v14 = vadd.f32 %v410_v12, %v1907_v47  ;;  %v667_v15 = vpop.f32.mrb[55].mxu1  ;;  %1087 = vmatprep.mubr.f32.mxu1 %v799_v6 }
 0x19d   :  { %v668_v16 = vadd.f32 %v667_v15, %v1909_v48  ;;  %1312 = vmatprep.mubr.f32.mxu0 %v801_v9  ;;  %1088 = vmatmul.mubr.f32.gmra.mrb[116].mxu1 %v798_v8  ;;  %v802_v20 = vmax.f32 %v409_v10, 0.0 }
 0x19e   :  { %v804_v17 = vmax.f32 %v666_v13, 0.0  ;;  %v803_v18 = vmax.f32 %v411_v14, 0.0  ;;  %1313 = vmatmul.mubr.f32.gmra.mrb[116].mxu0 %v800_v5  ;;  %v414_v19 = vpop.f32.mrb[56].mxu0 }
 0x19f   :  { %v805_v21 = vmax.f32 %v668_v16, 0.0  ;;  %v415_v40 = vadd.f32 %v414_v19, %v1903_v45  ;;  %v671_v22 = vpop.f32.mrb[56].mxu1  ;;  %v416_v23 = vpop.f32.mrb[57].mxu0 }
 0x1a0   :  { %v672_v24 = vadd.f32 %v671_v22, %v1905_v46  ;;  %v417_v25 = vadd.f32 %v416_v23, %v1907_v47  ;;  %v673_v26 = vpop.f32.mrb[57].mxu1  ;;  %1092 = vmatprep.mubr.f32.mxu1 %v803_v18 }
 0x1a1   :  { %v674_v27 = vadd.f32 %v673_v26, %v1909_v48  ;;  %1317 = vmatprep.mubr.f32.mxu0 %v805_v21  ;;  %1093 = vmatmul.mubr.f32.gmra.mrb[118].mxu1 %v802_v20  ;;  %v806_v31 = vmax.f32 %v415_v40, 0.0 }
 0x1a2   :  { %v808_v28 = vmax.f32 %v672_v24, 0.0  ;;  %v807_v29 = vmax.f32 %v417_v25, 0.0  ;;  %1318 = vmatmul.mubr.f32.gmra.mrb[118].mxu0 %v804_v17  ;;  %v420_v30 = vpop.f32.mrb[58].mxu0 }
 0x1a3   :  { %v809_v32 = vmax.f32 %v674_v27, 0.0  ;;  %v421_v33 = vadd.f32 %v420_v30, %v1903_v45  ;;  %v677_v34 = vpop.f32.mrb[58].mxu1  ;;  %v422_v35 = vpop.f32.mrb[59].mxu0 }
 0x1a4   :  { %v678_v36 = vadd.f32 %v677_v34, %v1905_v46  ;;  %v423_v37 = vadd.f32 %v422_v35, %v1907_v47  ;;  %v679_v38 = vpop.f32.mrb[59].mxu1  ;;  %1097 = vmatprep.mubr.f32.mxu1 %v807_v29 }
 0x1a5   :  { %v680_v39 = vadd.f32 %v679_v38, %v1909_v48  ;;  %1322 = vmatprep.mubr.f32.mxu0 %v809_v32  ;;  %1098 = vmatmul.mubr.f32.gmra.mrb[120].mxu1 %v806_v31  ;;  %v810_v44 = vmax.f32 %v421_v33, 0.0 }
 0x1a6   :  { %v812_v41 = vmax.f32 %v678_v36, 0.0  ;;  %v811_v42 = vmax.f32 %v423_v37, 0.0  ;;  %1323 = vmatmul.mubr.f32.gmra.mrb[120].mxu0 %v808_v28  ;;  %v426_v43 = vpop.f32.mrb[60].mxu0 }
 0x1a7   :  { %v813_v0 = vmax.f32 %v680_v39, 0.0  ;;  %v427_v49 = vadd.f32 %v426_v43, %v1903_v45  ;;  %v683_v50 = vpop.f32.mrb[60].mxu1  ;;  %v428_v51 = vpop.f32.mrb[61].mxu0 }
 0x1a8   :  { %v684_v52 = vadd.f32 %v683_v50, %v1905_v46  ;;  %v429_v53 = vadd.f32 %v428_v51, %v1907_v47  ;;  %v685_v54 = vpop.f32.mrb[61].mxu1  ;;  %1102 = vmatprep.mubr.f32.mxu1 %v811_v42 }
 0x1a9   :  { %v686_v55 = vadd.f32 %v685_v54, %v1909_v48  ;;  %1327 = vmatprep.mubr.f32.mxu0 %v813_v0  ;;  %1103 = vmatmul.mubr.f32.gmra.mrb[122].mxu1 %v810_v44  ;;  %v814_v59 = vmax.f32 %v427_v49, 0.0 }
 0x1aa   :  { %v816_v56 = vmax.f32 %v684_v52, 0.0  ;;  %v815_v57 = vmax.f32 %v429_v53, 0.0  ;;  %1328 = vmatmul.mubr.f32.gmra.mrb[122].mxu0 %v812_v41  ;;  %v432_v58 = vpop.f32.mrb[62].mxu0 }
 0x1ab   :  { %v817_v60 = vmax.f32 %v686_v55, 0.0  ;;  %v433_v61 = vadd.f32 %v432_v58, %v1903_v45  ;;  %v689_v62 = vpop.f32.mrb[62].mxu1  ;;  %v434_v63 = vpop.f32.mrb[63].mxu0  ;;  %v2042_v45 = vld [vmem:[%s2095_s4] ss:$0 sm:$0xff]  ;;  %s1731_s4 = smov [#allocation8]  }
 0x1ac   :  { %v690_v1 = vadd.f32 %v689_v62, %v1905_v46  ;;  %v435_v2 = vadd.f32 %v434_v63, %v1907_v47  ;;  %v691_v3 = vpop.f32.mrb[63].mxu1  ;;  %1107 = vmatprep.mubr.f32.mxu1 %v815_v57  ;;  %s1380_s8 = sshll.u32 %s1731_s4, 4  ;;  %s1381_s8 = int_to_ptr.vmem [resolvable:$true] %s1380_s8 }
 0x1ad   :  { %v692_v4 = vadd.f32 %v691_v3, %v1909_v48  ;;  %1332 = vmatprep.mubr.f32.mxu0 %v817_v60  ;;  %1108 = vmatmul.mubr.f32.gmra.mrb[124].mxu1 %v814_v59  ;;  %v818_v7 = vmax.f32 %v433_v61, 0.0  ;;  %s1694_s9 = scalar_lea.vmem %s1381_s8, 4096  ;;  %p1699_p11 = scmp.lt.s32.totalorder %s1381_s8, %s1381_s8 }
 0x1ae   :  { %v820_v5 = vmax.f32 %v690_v1, 0.0  ;;  %v819_v6 = vmax.f32 %v435_v2, 0.0  ;;  %1333 = vmatmul.mubr.f32.gmra.mrb[124].mxu0 %v816_v56  ;;  %p1695_p10 = scmp.ne.s32.totalorder %s1381_s8, %s1694_s9  ;;  %p1700_p12 = scmp.lt.s32.totalorder %s1694_s9, %s1694_s9 }
 0x1af   :  { %v821_v8 = vmax.f32 %v692_v4, 0.0 }
 0x1b0   :  { %1112 = vmatprep.mubr.f32.mxu1 %v819_v6  ;;  %p1701_p13 = por %p1700_p12, %p1699_p11 }
 0x1b1   :  { %1337 = vmatprep.mubr.f32.mxu0 %v821_v8  ;;  %1113 = vmatmul.mubr.f32.gmra.mrb[126].mxu1 %v818_v7 }
 0x1b2   :  { %1338 = vmatmul.mubr.f32.gmra.mrb[126].mxu0 %v820_v5  ;;  %p1702_p0 = pnand %p1701_p13, %p1695_p10 }
 0x208   :  { %v959_v46 = vpop.f32.mrb[64].mxu1 }
 0x209   :  { %v960_v47 = vadd.f32 %v2042_v45, %v959_v46  ;;  %v1184_v48 = vpop.f32.mrb[64].mxu0  ;;  %v961_v9 = vpop.f32.mrb[65].mxu1 }
 0x20a   :  { %v1186_v10 = vpop.f32.mrb[65].mxu0 }
 0x20b   :  { %v1185_v11 = vadd.f32 %v1184_v48, %v960_v47 }
 0x20c   :  { %v964_v12 = vpop.f32.mrb[66].mxu1 }
 0x20d   :  { %1343 = vst [vmem:[#allocation8] sm:$0xff] %v1185_v11  ;;  %v965_v13 = vadd.f32 %v2042_v45, %v964_v12  ;;  %v1189_v14 = vpop.f32.mrb[66].mxu0  ;;  %v966_v15 = vpop.f32.mrb[67].mxu1 }
 0x20e   :  { %v1191_v16 = vpop.f32.mrb[67].mxu0 }
 0x20f   :  { %v1190_v17 = vadd.f32 %v1189_v14, %v965_v13 }
 0x210   :  { %v969_v18 = vpop.f32.mrb[68].mxu1 }
 0x211   :  { %1344 = vst [vmem:[#allocation8 + $0x8] sm:$0xff] %v1190_v17  ;;  %v970_v19 = vadd.f32 %v2042_v45, %v969_v18  ;;  %v1194_v20 = vpop.f32.mrb[68].mxu0  ;;  %v971_v21 = vpop.f32.mrb[69].mxu1 }
 0x212   :  { %v1196_v40 = vpop.f32.mrb[69].mxu0 }
 0x213   :  { %v1195_v22 = vadd.f32 %v1194_v20, %v970_v19 }
 0x214   :  { %v974_v23 = vpop.f32.mrb[70].mxu1 }
 0x215   :  { %1345 = vst [vmem:[#allocation8 + $0x10] sm:$0xff] %v1195_v22  ;;  %v975_v24 = vadd.f32 %v2042_v45, %v974_v23  ;;  %v1199_v25 = vpop.f32.mrb[70].mxu0  ;;  %v976_v26 = vpop.f32.mrb[71].mxu1 }
 0x216   :  { %v1201_v27 = vpop.f32.mrb[71].mxu0 }
 0x217   :  { %v1200_v28 = vadd.f32 %v1199_v25, %v975_v24 }
 0x218   :  { %v979_v29 = vpop.f32.mrb[72].mxu1 }
 0x219   :  { %1346 = vst [vmem:[#allocation8 + $0x18] sm:$0xff] %v1200_v28  ;;  %v980_v30 = vadd.f32 %v2042_v45, %v979_v29  ;;  %v1204_v31 = vpop.f32.mrb[72].mxu0  ;;  %v981_v32 = vpop.f32.mrb[73].mxu1 }
 0x21a   :  { %v1206_v33 = vpop.f32.mrb[73].mxu0 }
 0x21b   :  { %v1205_v34 = vadd.f32 %v1204_v31, %v980_v30 }
 0x21c   :  { %v984_v35 = vpop.f32.mrb[74].mxu1 }
 0x21d   :  { %1347 = vst [vmem:[#allocation8 + $0x20] sm:$0xff] %v1205_v34  ;;  %v985_v36 = vadd.f32 %v2042_v45, %v984_v35  ;;  %v1209_v37 = vpop.f32.mrb[74].mxu0  ;;  %v986_v38 = vpop.f32.mrb[75].mxu1 }
 0x21e   :  { %v1211_v39 = vpop.f32.mrb[75].mxu0 }
 0x21f   :  { %v1210_v41 = vadd.f32 %v1209_v37, %v985_v36 }
 0x220   :  { %v989_v42 = vpop.f32.mrb[76].mxu1 }
 0x221   :  { %1348 = vst [vmem:[#allocation8 + $0x28] sm:$0xff] %v1210_v41  ;;  %v990_v43 = vadd.f32 %v2042_v45, %v989_v42  ;;  %v1214_v44 = vpop.f32.mrb[76].mxu0  ;;  %v991_v0 = vpop.f32.mrb[77].mxu1 }
 0x222   :  { %v1216_v49 = vpop.f32.mrb[77].mxu0 }
 0x223   :  { %v1215_v50 = vadd.f32 %v1214_v44, %v990_v43 }
 0x224   :  { %v994_v51 = vpop.f32.mrb[78].mxu1 }
 0x225   :  { %1349 = vst [vmem:[#allocation8 + $0x30] sm:$0xff] %v1215_v50  ;;  %v995_v52 = vadd.f32 %v2042_v45, %v994_v51  ;;  %v1219_v53 = vpop.f32.mrb[78].mxu0  ;;  %v996_v54 = vpop.f32.mrb[79].mxu1 }
 0x226   :  { %v1221_v55 = vpop.f32.mrb[79].mxu0 }
 0x227   :  { %v1220_v56 = vadd.f32 %v1219_v53, %v995_v52 }
 0x228   :  { %v999_v57 = vpop.f32.mrb[80].mxu1 }
 0x229   :  { %1350 = vst [vmem:[#allocation8 + $0x38] sm:$0xff] %v1220_v56  ;;  %v1000_v58 = vadd.f32 %v2042_v45, %v999_v57  ;;  %v1224_v59 = vpop.f32.mrb[80].mxu0  ;;  %v1001_v60 = vpop.f32.mrb[81].mxu1 }
 0x22a   :  { %v1226_v61 = vpop.f32.mrb[81].mxu0 }
 0x22b   :  { %v1225_v62 = vadd.f32 %v1224_v59, %v1000_v58 }
 0x22c   :  { %v1004_v63 = vpop.f32.mrb[82].mxu1 }
 0x22d   :  { %1351 = vst [vmem:[#allocation8 + $0x40] sm:$0xff] %v1225_v62  ;;  %v1005_v1 = vadd.f32 %v2042_v45, %v1004_v63  ;;  %v1229_v2 = vpop.f32.mrb[82].mxu0  ;;  %v1006_v3 = vpop.f32.mrb[83].mxu1 }
 0x22e   :  { %v1231_v4 = vpop.f32.mrb[83].mxu0 }
 0x22f   :  { %v1230_v5 = vadd.f32 %v1229_v2, %v1005_v1 }
 0x230   :  { %v1009_v6 = vpop.f32.mrb[84].mxu1 }
 0x231   :  { %1352 = vst [vmem:[#allocation8 + $0x48] sm:$0xff] %v1230_v5  ;;  %v1010_v7 = vadd.f32 %v2042_v45, %v1009_v6  ;;  %v1234_v8 = vpop.f32.mrb[84].mxu0  ;;  %v1011_v46 = vpop.f32.mrb[85].mxu1 }
 0x232   :  { %v1236_v47 = vpop.f32.mrb[85].mxu0 }
 0x233   :  { %v1235_v48 = vadd.f32 %v1234_v8, %v1010_v7 }
 0x234   :  { %v1014_v9 = vpop.f32.mrb[86].mxu1 }
 0x235   :  { %1353 = vst [vmem:[#allocation8 + $0x50] sm:$0xff] %v1235_v48  ;;  %v1015_v10 = vadd.f32 %v2042_v45, %v1014_v9  ;;  %v1239_v11 = vpop.f32.mrb[86].mxu0  ;;  %v1016_v12 = vpop.f32.mrb[87].mxu1 }
 0x236   :  { %v1241_v13 = vpop.f32.mrb[87].mxu0 }
 0x237   :  { %v1240_v14 = vadd.f32 %v1239_v11, %v1015_v10 }
 0x238   :  { %v1019_v15 = vpop.f32.mrb[88].mxu1 }
 0x239   :  { %1354 = vst [vmem:[#allocation8 + $0x58] sm:$0xff] %v1240_v14  ;;  %v1020_v16 = vadd.f32 %v2042_v45, %v1019_v15  ;;  %v1244_v17 = vpop.f32.mrb[88].mxu0  ;;  %v1021_v18 = vpop.f32.mrb[89].mxu1 }
 0x23a   :  { %v1246_v19 = vpop.f32.mrb[89].mxu0 }
 0x23b   :  { %v1245_v20 = vadd.f32 %v1244_v17, %v1020_v16 }
 0x23c   :  { %v1024_v21 = vpop.f32.mrb[90].mxu1 }
 0x23d   :  { %1355 = vst [vmem:[#allocation8 + $0x60] sm:$0xff] %v1245_v20  ;;  %v1025_v40 = vadd.f32 %v2042_v45, %v1024_v21  ;;  %v1249_v22 = vpop.f32.mrb[90].mxu0  ;;  %v1026_v23 = vpop.f32.mrb[91].mxu1 }
 0x23e   :  { %v1251_v24 = vpop.f32.mrb[91].mxu0 }
 0x23f   :  { %v1250_v25 = vadd.f32 %v1249_v22, %v1025_v40 }
 0x240   :  { %v1029_v26 = vpop.f32.mrb[92].mxu1 }
 0x241   :  { %1356 = vst [vmem:[#allocation8 + $0x68] sm:$0xff] %v1250_v25  ;;  %v1030_v27 = vadd.f32 %v2042_v45, %v1029_v26  ;;  %v1254_v28 = vpop.f32.mrb[92].mxu0  ;;  %v1031_v29 = vpop.f32.mrb[93].mxu1 }
 0x242   :  { %v1256_v30 = vpop.f32.mrb[93].mxu0 }
 0x243   :  { %v1255_v31 = vadd.f32 %v1254_v28, %v1030_v27 }
 0x244   :  { %v1034_v32 = vpop.f32.mrb[94].mxu1 }
 0x245   :  { %1357 = vst [vmem:[#allocation8 + $0x70] sm:$0xff] %v1255_v31  ;;  %v1035_v33 = vadd.f32 %v2042_v45, %v1034_v32  ;;  %v1259_v34 = vpop.f32.mrb[94].mxu0  ;;  %v1036_v35 = vpop.f32.mrb[95].mxu1 }
 0x246   :  { %v1261_v36 = vpop.f32.mrb[95].mxu0 }
 0x247   :  { %v1260_v37 = vadd.f32 %v1259_v34, %v1035_v33 }
 0x248   :  { %v1039_v38 = vpop.f32.mrb[96].mxu1 }
 0x249   :  { %1358 = vst [vmem:[#allocation8 + $0x78] sm:$0xff] %v1260_v37  ;;  %v1040_v39 = vadd.f32 %v2042_v45, %v1039_v38  ;;  %v1264_v41 = vpop.f32.mrb[96].mxu0  ;;  %v1041_v42 = vpop.f32.mrb[97].mxu1 }
 0x24a   :  { %v1266_v43 = vpop.f32.mrb[97].mxu0 }
 0x24b   :  { %v1265_v44 = vadd.f32 %v1264_v41, %v1040_v39 }
 0x24c   :  { %v1044_v0 = vpop.f32.mrb[98].mxu1 }
 0x24d   :  { %1359 = vst [vmem:[#allocation8 + $0x80] sm:$0xff] %v1265_v44  ;;  %v1045_v49 = vadd.f32 %v2042_v45, %v1044_v0  ;;  %v1269_v50 = vpop.f32.mrb[98].mxu0  ;;  %v1046_v51 = vpop.f32.mrb[99].mxu1 }
 0x24e   :  { %v1271_v52 = vpop.f32.mrb[99].mxu0 }
 0x24f   :  { %v1270_v53 = vadd.f32 %v1269_v50, %v1045_v49 }
 0x250   :  { %v1049_v54 = vpop.f32.mrb[100].mxu1 }
 0x251   :  { %1360 = vst [vmem:[#allocation8 + $0x88] sm:$0xff] %v1270_v53  ;;  %v1050_v55 = vadd.f32 %v2042_v45, %v1049_v54  ;;  %v1274_v56 = vpop.f32.mrb[100].mxu0  ;;  %v1051_v57 = vpop.f32.mrb[101].mxu1 }
 0x252   :  { %v1276_v58 = vpop.f32.mrb[101].mxu0 }
 0x253   :  { %v1275_v59 = vadd.f32 %v1274_v56, %v1050_v55 }
 0x254   :  { %v1054_v60 = vpop.f32.mrb[102].mxu1 }
 0x255   :  { %1361 = vst [vmem:[#allocation8 + $0x90] sm:$0xff] %v1275_v59  ;;  %v1055_v61 = vadd.f32 %v2042_v45, %v1054_v60  ;;  %v1279_v62 = vpop.f32.mrb[102].mxu0  ;;  %v1056_v63 = vpop.f32.mrb[103].mxu1 }
 0x256   :  { %v1281_v1 = vpop.f32.mrb[103].mxu0 }
 0x257   :  { %v1280_v2 = vadd.f32 %v1279_v62, %v1055_v61 }
 0x258   :  { %v1059_v3 = vpop.f32.mrb[104].mxu1 }
 0x259   :  { %1362 = vst [vmem:[#allocation8 + $0x98] sm:$0xff] %v1280_v2  ;;  %v1060_v4 = vadd.f32 %v2042_v45, %v1059_v3  ;;  %v1284_v5 = vpop.f32.mrb[104].mxu0  ;;  %v1061_v6 = vpop.f32.mrb[105].mxu1 }
 0x25a   :  { %v1286_v7 = vpop.f32.mrb[105].mxu0 }
 0x25b   :  { %v1285_v8 = vadd.f32 %v1284_v5, %v1060_v4 }
 0x25c   :  { %v1064_v46 = vpop.f32.mrb[106].mxu1 }
 0x25d   :  { %1363 = vst [vmem:[#allocation8 + $0xa0] sm:$0xff] %v1285_v8  ;;  %v1065_v47 = vadd.f32 %v2042_v45, %v1064_v46  ;;  %v1289_v48 = vpop.f32.mrb[106].mxu0  ;;  %v1066_v9 = vpop.f32.mrb[107].mxu1 }
 0x25e   :  { %v1291_v10 = vpop.f32.mrb[107].mxu0 }
 0x25f   :  { %v1290_v11 = vadd.f32 %v1289_v48, %v1065_v47 }
 0x260   :  { %v1069_v12 = vpop.f32.mrb[108].mxu1 }
 0x261   :  { %1364 = vst [vmem:[#allocation8 + $0xa8] sm:$0xff] %v1290_v11  ;;  %v1070_v13 = vadd.f32 %v2042_v45, %v1069_v12  ;;  %v1294_v14 = vpop.f32.mrb[108].mxu0  ;;  %v1071_v15 = vpop.f32.mrb[109].mxu1 }
 0x262   :  { %v1296_v16 = vpop.f32.mrb[109].mxu0 }
 0x263   :  { %v1295_v17 = vadd.f32 %v1294_v14, %v1070_v13 }
 0x264   :  { %v1074_v18 = vpop.f32.mrb[110].mxu1 }
 0x265   :  { %1365 = vst [vmem:[#allocation8 + $0xb0] sm:$0xff] %v1295_v17  ;;  %v1075_v19 = vadd.f32 %v2042_v45, %v1074_v18  ;;  %v1299_v20 = vpop.f32.mrb[110].mxu0  ;;  %v1076_v21 = vpop.f32.mrb[111].mxu1 }
 0x266   :  { %v1301_v40 = vpop.f32.mrb[111].mxu0 }
 0x267   :  { %v1300_v22 = vadd.f32 %v1299_v20, %v1075_v19 }
 0x268   :  { %v1079_v23 = vpop.f32.mrb[112].mxu1 }
 0x269   :  { %1366 = vst [vmem:[#allocation8 + $0xb8] sm:$0xff] %v1300_v22  ;;  %v1080_v24 = vadd.f32 %v2042_v45, %v1079_v23  ;;  %v1304_v25 = vpop.f32.mrb[112].mxu0  ;;  %v1081_v26 = vpop.f32.mrb[113].mxu1 }
 0x26a   :  { %v1306_v27 = vpop.f32.mrb[113].mxu0 }
 0x26b   :  { %v1305_v28 = vadd.f32 %v1304_v25, %v1080_v24 }
 0x26c   :  { %v1084_v29 = vpop.f32.mrb[114].mxu1 }
 0x26d   :  { %1367 = vst [vmem:[#allocation8 + $0xc0] sm:$0xff] %v1305_v28  ;;  %v1085_v30 = vadd.f32 %v2042_v45, %v1084_v29  ;;  %v1309_v31 = vpop.f32.mrb[114].mxu0  ;;  %v1086_v32 = vpop.f32.mrb[115].mxu1 }
 0x26e   :  { %v1311_v33 = vpop.f32.mrb[115].mxu0 }
 0x26f   :  { %v1310_v34 = vadd.f32 %v1309_v31, %v1085_v30 }
 0x270   :  { %v1089_v35 = vpop.f32.mrb[116].mxu1 }
 0x271   :  { %1368 = vst [vmem:[#allocation8 + $0xc8] sm:$0xff] %v1310_v34  ;;  %v1090_v36 = vadd.f32 %v2042_v45, %v1089_v35  ;;  %v1314_v37 = vpop.f32.mrb[116].mxu0  ;;  %v1091_v38 = vpop.f32.mrb[117].mxu1 }
 0x272   :  { %v1316_v39 = vpop.f32.mrb[117].mxu0 }
 0x273   :  { %v1315_v41 = vadd.f32 %v1314_v37, %v1090_v36 }
 0x274   :  { %v1094_v42 = vpop.f32.mrb[118].mxu1 }
 0x275   :  { %1369 = vst [vmem:[#allocation8 + $0xd0] sm:$0xff] %v1315_v41  ;;  %v1095_v43 = vadd.f32 %v2042_v45, %v1094_v42  ;;  %v1319_v44 = vpop.f32.mrb[118].mxu0  ;;  %v1096_v0 = vpop.f32.mrb[119].mxu1 }
 0x276   :  { %v1321_v49 = vpop.f32.mrb[119].mxu0 }
 0x277   :  { %v1320_v50 = vadd.f32 %v1319_v44, %v1095_v43 }
 0x278   :  { %v1099_v51 = vpop.f32.mrb[120].mxu1 }
 0x279   :  { %1370 = vst [vmem:[#allocation8 + $0xd8] sm:$0xff] %v1320_v50  ;;  %v1100_v52 = vadd.f32 %v2042_v45, %v1099_v51  ;;  %v1324_v53 = vpop.f32.mrb[120].mxu0  ;;  %v1101_v54 = vpop.f32.mrb[121].mxu1 }
 0x27a   :  { %v1326_v55 = vpop.f32.mrb[121].mxu0 }
 0x27b   :  { %v1325_v56 = vadd.f32 %v1324_v53, %v1100_v52 }
 0x27c   :  { %v1104_v57 = vpop.f32.mrb[122].mxu1 }
 0x27d   :  { %1371 = vst [vmem:[#allocation8 + $0xe0] sm:$0xff] %v1325_v56  ;;  %v1105_v58 = vadd.f32 %v2042_v45, %v1104_v57  ;;  %v1329_v59 = vpop.f32.mrb[122].mxu0  ;;  %v1106_v60 = vpop.f32.mrb[123].mxu1 }
 0x27e   :  { %v1331_v61 = vpop.f32.mrb[123].mxu0 }
 0x27f   :  { %v1330_v62 = vadd.f32 %v1329_v59, %v1105_v58 }
 0x280   :  { %v1109_v63 = vpop.f32.mrb[124].mxu1 }
 0x281   :  { %1372 = vst [vmem:[#allocation8 + $0xe8] sm:$0xff] %v1330_v62  ;;  %v1110_v1 = vadd.f32 %v2042_v45, %v1109_v63  ;;  %v1334_v2 = vpop.f32.mrb[124].mxu0  ;;  %v1111_v3 = vpop.f32.mrb[125].mxu1 }
 0x282   :  { %v1336_v4 = vpop.f32.mrb[125].mxu0 }
 0x283   :  { %v1335_v5 = vadd.f32 %v1334_v2, %v1110_v1 }
 0x284   :  { %v1114_v6 = vpop.f32.mrb[126].mxu1 }
 0x285   :  { %1373 = vst [vmem:[#allocation8 + $0xf0] sm:$0xff] %v1335_v5  ;;  %v1115_v7 = vadd.f32 %v2042_v45, %v1114_v6  ;;  %v1339_v8 = vpop.f32.mrb[126].mxu0  ;;  %v1116_v46 = vpop.f32.mrb[127].mxu1 }
 0x286   :  { %v1341_v47 = vpop.f32.mrb[127].mxu0 }
 0x287   :  { %v1340_v48 = vadd.f32 %v1339_v8, %v1115_v7 }
 0x289   :  { %1374 = vst [vmem:[#allocation8 + $0xf8] sm:$0xff] %v1340_v48 }
 0x28a   :  { %1705 = shalt.err (!%p1702_p0)
}
 0x28b   :  { %s1706_s12 = scalar_lea.hbm %s2096_s5, 4096 }
 0x28c   :  { %p1707_p1 = scmp.ne.s32.totalorder %s2096_s5, %s1706_s12  ;;  %p1710_p2 = scmp.lt.u32.totalorder %s1706_s12, %s2096_s5 }
 0x28e   :  { %p1712_p3 = pnand %p1710_p2, %p1707_p1 }
 0x290   :  { %1715 = shalt.err (!%p1712_p3)
}
 0x291   :  { %1386 = dma.vmem_to_hbm [thread:$0]  %s1381_s8, 4096, %s2096_s5, [#allocation4], %s1726_s1, %s1726_s1, %s1727_s17  }
 0x292   :  { %1720 = dma.done.wait [#allocation4], 4096  }
 0x293   :  { %1721 = vsyncadd [#allocation4], 4294963200 }
 0x294   :  { %1390 = vsyncpa [#allocation3], 1 }
 0x295   :  { %1391 = vsyncpa [#allocation6], 1 }
 0x296   :  { %1392 = vsyncpa [#allocation4], 1 }

</bundles_post_ra>
